<compile_context>
chip_gen: v5e
topology: v5e:2x2
jax: 0.10.0
libtpu: 0.0.40
codegen_flags: <defaults>
</compile_context>

<pallas_src>
import functools

import jax
import jax.numpy as jnp
from jax.experimental import pallas as pl
from jax.experimental.pallas import tpu as pltpu

_VMEM_LIMIT = 32 * 1024 * 1024  # safe on v5e/v6e/v7x, far above actual usage


def _round_up(x, m):
    return (x + m - 1) // m * m


def _pick_tile_m(mp):
    for tm in (512, 256, 128):
        if mp % tm == 0:
            return tm
    return 128  # unreachable: mp is always a multiple of 128


# ----------------------------- Pallas kernels ------------------------------

def _matmul_t_bias_kernel(w_ref, x_ref, b_ref, o_ref):
    # w: (N, Kp) bf16 (resident), x: (Kp, TM) bf16, b: (N, 1) f32 (resident)
    # o: (N, TM) f32 -- lane-dense output (TM on lanes, multiple of 128).
    acc = jnp.dot(w_ref[...], x_ref[...], preferred_element_type=jnp.float32)
    o_ref[...] = acc + b_ref[...]


def pallas_matmul_t_bias(w_t, x_t, b):
    """out[n, m] = sum_k w_t[n, k] * x_t[k, m] + b[n].

    w_t: (N, K) f32, x_t: (K, M) f32, b: (N,) f32  ->  (N, M) f32.
    Tiled over M; weights/bias resident; bf16 inputs, f32 accumulation.
    """
    N, K = w_t.shape
    K2, M = x_t.shape
    assert K == K2
    Kp = _round_up(K, 32)           # sublane/packing friendly contraction dim
    Mp = _round_up(M, 128)          # lane-dense output
    TM = _pick_tile_m(Mp)
    grid = (Mp // TM,)

    x_p = jnp.pad(x_t, ((0, Kp - K), (0, Mp - M))).astype(jnp.bfloat16)
    w_p = jnp.pad(w_t, ((0, 0), (0, Kp - K))).astype(jnp.bfloat16)
    b_p = b.reshape(N, 1).astype(jnp.float32)

    out = pl.pallas_call(
        _matmul_t_bias_kernel,
        out_shape=jax.ShapeDtypeStruct((N, Mp), jnp.float32),
        grid=grid,
        in_specs=[
            pl.BlockSpec((N, Kp), lambda i: (0, 0)),    # weights: resident
            pl.BlockSpec((Kp, TM), lambda i: (0, i)),   # activations: M-tiled
            pl.BlockSpec((N, 1), lambda i: (0, 0)),     # bias: resident
        ],
        out_specs=pl.BlockSpec((N, TM), lambda i: (0, i)),
        compiler_params=pltpu.CompilerParams(
            dimension_semantics=("parallel",),
            vmem_limit_bytes=_VMEM_LIMIT,
        ),
        cost_estimate=pl.CostEstimate(
            flops=2 * N * Kp * Mp,
            transcendentals=0,
            bytes_accessed=int(x_p.size * 2 + w_p.size * 2 + N * Mp * 4),
        ),
    )(w_p, x_p, b_p)
    return out[:, :M]


def _gn_elu_kernel(x_ref, g_ref, b_ref, o_ref, *, cg, eps):
    # x: (RB, L) f32 where each row is one (batch, group) and L = Cg*H*W.
    x = x_ref[...]
    rb, L = x.shape
    mean = jnp.mean(x, axis=1, keepdims=True)
    xc = x - mean
    var = jnp.mean(xc * xc, axis=1, keepdims=True)          # biased (PyTorch GN)
    xn = xc * jax.lax.rsqrt(var + eps)
    g = g_ref[...]                                           # (RB, Cg)
    b = b_ref[...]
    if cg == 1:
        y = xn * g + b                                       # per-row scalar affine
    else:
        hw = L // cg
        y = (xn.reshape(rb, cg, hw) * g[:, :, None]
             + b[:, :, None]).reshape(rb, L)
    # ELU(alpha=1): y if y > 0 else exp(y) - 1 (clamp avoids overflow in dead branch)
    o_ref[...] = jnp.where(y > 0, y, jnp.exp(jnp.minimum(y, 0.0)) - 1.0)


def pallas_groupnorm_elu(x, gamma, beta, num_groups, eps=1e-5):
    B, C, H, W = x.shape
    G = num_groups
    Cg = C // G
    L = Cg * H * W
    BG = B * G
    x2 = x.reshape(BG, L)
    g2 = jnp.tile(gamma.reshape(G, Cg), (B, 1)).astype(jnp.float32)   # (BG, Cg)
    b2 = jnp.tile(beta.reshape(G, Cg), (B, 1)).astype(jnp.float32)
    RB = 8 if BG % 8 == 0 else BG
    grid = (BG // RB,)
    out = pl.pallas_call(
        functools.partial(_gn_elu_kernel, cg=Cg, eps=eps),
        out_shape=jax.ShapeDtypeStruct((BG, L), jnp.float32),
        grid=grid,
        in_specs=[
            pl.BlockSpec((RB, L), lambda i: (i, 0)),
            pl.BlockSpec((RB, Cg), lambda i: (i, 0)),
            pl.BlockSpec((RB, Cg), lambda i: (i, 0)),
        ],
        out_specs=pl.BlockSpec((RB, L), lambda i: (i, 0)),
        compiler_params=pltpu.CompilerParams(
            dimension_semantics=("parallel",),
            vmem_limit_bytes=_VMEM_LIMIT,
        ),
    )(x2, g2, b2)
    return out.reshape(B, C, H, W)


# ------------------------------ conv helpers -------------------------------

def conv3d_3x3x3_pad1_cin1(x, weight, bias):
    """x: (B, C, H, W) treated as a single-channel 3D volume (depth=C).
    weight: (d, 1, 3, 3, 3) -> channel-major output (d, C, B, H, W)."""
    B, C, H, W = x.shape
    d = weight.shape[0]
    xt = jnp.transpose(x, (1, 0, 2, 3))                      # (C, B, H, W)
    xp = jnp.pad(xt, ((1, 1), (0, 0), (1, 1), (1, 1)))
    taps = [xp[kz:kz + C, :, ky:ky + H, kx:kx + W]
            for kz in range(3) for ky in range(3) for kx in range(3)]
    # (27, C, B, H, W) -> (K, M); K order (kz,ky,kx) matches weight.reshape.
    patches = jnp.stack(taps, axis=0).reshape(27, C * B * H * W)
    wm = weight.reshape(d, 27)
    out = pallas_matmul_t_bias(wm, patches, bias)            # (d, C*B*H*W)
    return out.reshape(d, C, B, H, W)


def conv2d_3x3_pad1_chmajor(y, weight, bias):
    """y: (d, C, B, H, W) channel-major activations (channel index = dd*C+cc).
    weight: (Cout, d*C, 3, 3) -> output (Cout, B, H, W)."""
    d, C, B, H, W = y.shape
    Cout = weight.shape[0]
    yp = jnp.pad(y, ((0, 0), (0, 0), (0, 0), (1, 1), (1, 1)))
    taps = [yp[:, :, :, ky:ky + H, kx:kx + W]
            for ky in range(3) for kx in range(3)]
    # (d, C, 9, B, H, W) -> (K, M); K order (cin, ky, kx) matches weight.reshape.
    patches = jnp.stack(taps, axis=2).reshape(d * C * 9, B * H * W)
    wm = weight.reshape(Cout, d * C * 9)
    out = pallas_matmul_t_bias(wm, patches, bias)            # (Cout, B*H*W)
    return out.reshape(Cout, B, H, W)


def downpixel_w(x, stride):
    b, c, h, w = x.shape
    x = x.reshape(b, c, h, w // stride, stride)
    x = jnp.transpose(x, (0, 1, 4, 2, 3))
    return x.reshape(b, c * stride, h, w // stride)


def downpixel_h(x, stride):
    b, c, h, w = x.shape
    x = x.reshape(b, c, h // stride, stride, w)
    x = jnp.transpose(x, (0, 1, 3, 2, 4))
    return x.reshape(b, c * stride, h // stride, w)


# ------------------------------ full forward -------------------------------

def _num_groups(out_channels):
    for g in (16, 8, 4, 2):
        if out_channels % g == 0:
            return g
    return 1


def _branch(x, w3, b3, w2, b2, gn_g, gn_b, num_groups):
    # conv3d (1->d) -> view(b, d*c, h, w) -> conv2d -> GroupNorm -> ELU.
    y3 = conv3d_3x3x3_pad1_cin1(x, w3, b3)                   # (d, C, B, H, W)
    z = conv2d_3x3_pad1_chmajor(y3, w2, b2)                  # (Cout, B, H, W)
    z = jnp.transpose(z, (1, 0, 2, 3))                       # NCHW (tiny tensor)
    return pallas_groupnorm_elu(z, gn_g, gn_b, num_groups)


def down_pixel_3d_layer_axis(x, params, *, stride, d, num_groups):
    # W branch
    x = downpixel_w(x, stride)
    y = _branch(x, params["conv3d_w_w"], params["conv3d_w_b"],
                params["conv2d_w_w"], params["conv2d_w_b"],
                params["gn_w_g"], params["gn_w_b"], num_groups)
    # H branch
    y = downpixel_h(y, stride)
    z = _branch(y, params["conv3d_h_w"], params["conv3d_h_b"],
                params["conv2d_h_w"], params["conv2d_h_b"],
                params["gn_h_g"], params["gn_h_b"], num_groups)
    return z


def init_params(key, in_chs, stride, d):
    cin2d = in_chs * stride * d
    ks = jax.random.split(key, 12)
    f32 = jnp.float32
    params = {
        # Conv3d(1 -> d, 3x3x3)
        "conv3d_w_w": jax.random.normal(ks[0], (d, 1, 3, 3, 3), f32) * (1.0 / 27) ** 0.5,
        "conv3d_w_b": jax.random.normal(ks[1], (d,), f32) * 0.01,
        "conv3d_h_w": jax.random.normal(ks[2], (d, 1, 3, 3, 3), f32) * (1.0 / 27) ** 0.5,
        "conv3d_h_b": jax.random.normal(ks[3], (d,), f32) * 0.01,
        # Conv2d(in_chs*stride*d -> in_chs, 3x3)
        "conv2d_w_w": jax.random.normal(ks[4], (in_chs, cin2d, 3, 3), f32) * (1.0 / (cin2d * 9)) ** 0.5,
        "conv2d_w_b": jax.random.normal(ks[5], (in_chs,), f32) * 0.01,
        "conv2d_h_w": jax.random.normal(ks[6], (in_chs, cin2d, 3, 3), f32) * (1.0 / (cin2d * 9)) ** 0.5,
        "conv2d_h_b": jax.random.normal(ks[7], (in_chs,), f32) * 0.01,
        # GroupNorm affine (per channel = in_chs)
        "gn_w_g": 1.0 + 0.1 * jax.random.normal(ks[8], (in_chs,), f32),
        "gn_w_b": 0.1 * jax.random.normal(ks[9], (in_chs,), f32),
        "gn_h_g": 1.0 + 0.1 * jax.random.normal(ks[10], (in_chs,), f32),
        "gn_h_b": 0.1 * jax.random.normal(ks[11], (in_chs,), f32),
    }
    return params


# ---------------------------------- main -----------------------------------

if __name__ == "__main__":
    in_chs, stride, d = 4, 2, 8
    B, H, W = 2, 16, 16

    key = jax.random.PRNGKey(0)
    kx, kp = jax.random.split(key)
    x = jax.random.normal(kx, (B, in_chs, H, W), jnp.float32)
    params = init_params(kp, in_chs, stride, d)
    ng = _num_groups(in_chs)

    fwd = jax.jit(functools.partial(
        down_pixel_3d_layer_axis, stride=stride, d=d, num_groups=ng))
    out = jax.block_until_ready(fwd(x, params))

    expected_shape = (B, in_chs, H // stride, W // stride)
    assert out.shape == expected_shape, (out.shape, expected_shape)
    assert bool(jnp.all(jnp.isfinite(out)))
    print("KERNEL_OK")
</pallas_src>

<mosaic_0001>
module attributes {stable_mosaic.version = 11 : i64} {
  func.func @_matmul_t_bias_kernel(%arg0: i32, %arg1: memref<8x32xbf16, #tpu.memory_space<vmem>>, %arg2: memref<32x512xbf16, #tpu.memory_space<vmem>>, %arg3: memref<8x1xf32, #tpu.memory_space<vmem>>, %arg4: memref<8x512xf32, #tpu.memory_space<vmem>>) attributes {dimension_semantics = [#tpu.dimension_semantics<parallel>], iteration_bounds = array<i64: 4>, scalar_prefetch = 0 : i64, scratch_operands = 0 : i64, tpu.core_type = #tpu.core_type<tc>, window_params = [{pipeline_mode = #tpu.pipeline_mode<synchronous>, transform_indices = @transform_0, window_bounds = array<i64: 8, 32>}, {transform_indices = @transform_1, window_bounds = array<i64: 32, 512>}, {pipeline_mode = #tpu.pipeline_mode<synchronous>, transform_indices = @transform_2, window_bounds = array<i64: 8, 1>}, {transform_indices = @transform_3, window_bounds = array<i64: 8, 512>}]} {
    %c0 = arith.constant 0 : index
    %c0_0 = arith.constant 0 : index
    %0 = vector.load %arg1[%c0, %c0_0] : memref<8x32xbf16, #tpu.memory_space<vmem>>, vector<8x32xbf16>
    %c0_1 = arith.constant 0 : index
    %c0_2 = arith.constant 0 : index
    %1 = vector.load %arg2[%c0_1, %c0_2] : memref<32x512xbf16, #tpu.memory_space<vmem>>, vector<32x512xbf16>
    %cst = arith.constant dense<0.000000e+00> : vector<8x512xf32>
    %2 = tpu.matmul %0, %1, %cst {dimension_numbers = #tpu.dot_dimension_numbers<[1], [0], [0], [1], [0, 0, 1, 1], [], []>} : vector<8x32xbf16>, vector<32x512xbf16>, vector<8x512xf32> -> vector<8x512xf32>
    %c0_3 = arith.constant 0 : index
    %c0_4 = arith.constant 0 : index
    %3 = vector.load %arg3[%c0_3, %c0_4] : memref<8x1xf32, #tpu.memory_space<vmem>>, vector<8x1xf32>
    %4 = vector.broadcast %3 : vector<8x1xf32> to vector<8x512xf32>
    %5 = arith.addf %2, %4 : vector<8x512xf32>
    %c0_5 = arith.constant 0 : index
    %c0_6 = arith.constant 0 : index
    %6 = vector.load %arg4[%c0_5, %c0_6] : memref<8x512xf32, #tpu.memory_space<vmem>>, vector<8x512xf32>
    tpu.vector_store %arg4[%c0_5, %c0_6], %5 {strides = array<i32>} : memref<8x512xf32, #tpu.memory_space<vmem>>, vector<8x512xf32>,
    return
  }
  func.func @transform_0(%arg0: i32) -> (i32, i32) {
    %c0_i32 = arith.constant 0 : i32
    %c0_i32_0 = arith.constant 0 : i32
    %c0_i32_1 = arith.constant 0 : i32
    return %c0_i32, %c0_i32_0 : i32, i32
  }
  func.func @transform_1(%arg0: i32) -> (i32, i32) {
    %c0_i32 = arith.constant 0 : i32
    %c0_i32_0 = arith.constant 0 : i32
    return %c0_i32, %arg0 : i32, i32
  }
  func.func @transform_2(%arg0: i32) -> (i32, i32) {
    %c0_i32 = arith.constant 0 : i32
    %c0_i32_0 = arith.constant 0 : i32
    %c0_i32_1 = arith.constant 0 : i32
    return %c0_i32, %c0_i32_0 : i32, i32
  }
  func.func @transform_3(%arg0: i32) -> (i32, i32) {
    %c0_i32 = arith.constant 0 : i32
    %c0_i32_0 = arith.constant 0 : i32
    return %c0_i32, %arg0 : i32, i32
  }
}

module attributes {stable_mosaic.version = 11 : i64} {
  func.func @_matmul_t_bias_kernel(%arg0: i32, %arg1: memref<4x576xbf16, #tpu.memory_space<vmem>>, %arg2: memref<576x256xbf16, #tpu.memory_space<vmem>>, %arg3: memref<4x1xf32, #tpu.memory_space<vmem>>, %arg4: memref<4x256xf32, #tpu.memory_space<vmem>>) attributes {dimension_semantics = [#tpu.dimension_semantics<parallel>], iteration_bounds = array<i64: 1>, scalar_prefetch = 0 : i64, scratch_operands = 0 : i64, tpu.core_type = #tpu.core_type<tc>, window_params = [{pipeline_mode = #tpu.pipeline_mode<synchronous>, transform_indices = @transform_0, window_bounds = array<i64: 4, 576>}, {transform_indices = @transform_1, window_bounds = array<i64: 576, 256>}, {pipeline_mode = #tpu.pipeline_mode<synchronous>, transform_indices = @transform_2, window_bounds = array<i64: 4, 1>}, {transform_indices = @transform_3, window_bounds = array<i64: 4, 256>}]} {
    %c0 = arith.constant 0 : index
    %c0_0 = arith.constant 0 : index
    %0 = vector.load %arg1[%c0, %c0_0] : memref<4x576xbf16, #tpu.memory_space<vmem>>, vector<4x576xbf16>
    %c0_1 = arith.constant 0 : index
    %c0_2 = arith.constant 0 : index
    %1 = vector.load %arg2[%c0_1, %c0_2] : memref<576x256xbf16, #tpu.memory_space<vmem>>, vector<576x256xbf16>
    %cst = arith.constant dense<0.000000e+00> : vector<4x256xf32>
    %2 = tpu.matmul %0, %1, %cst {dimension_numbers = #tpu.dot_dimension_numbers<[1], [0], [0], [1], [0, 0, 1, 1], [], []>} : vector<4x576xbf16>, vector<576x256xbf16>, vector<4x256xf32> -> vector<4x256xf32>
    %c0_3 = arith.constant 0 : index
    %c0_4 = arith.constant 0 : index
    %3 = vector.load %arg3[%c0_3, %c0_4] : memref<4x1xf32, #tpu.memory_space<vmem>>, vector<4x1xf32>
    %4 = vector.broadcast %3 : vector<4x1xf32> to vector<4x256xf32>
    %5 = arith.addf %2, %4 : vector<4x256xf32>
    %c0_5 = arith.constant 0 : index
    %c0_6 = arith.constant 0 : index
    %6 = vector.load %arg4[%c0_5, %c0_6] : memref<4x256xf32, #tpu.memory_space<vmem>>, vector<4x256xf32>
    tpu.vector_store %arg4[%c0_5, %c0_6], %5 {strides = array<i32>} : memref<4x256xf32, #tpu.memory_space<vmem>>, vector<4x256xf32>,
    return
  }
  func.func @transform_0(%arg0: i32) -> (i32, i32) {
    %c0_i32 = arith.constant 0 : i32
    %c0_i32_0 = arith.constant 0 : i32
    %c0_i32_1 = arith.constant 0 : i32
    return %c0_i32, %c0_i32_0 : i32, i32
  }
  func.func @transform_1(%arg0: i32) -> (i32, i32) {
    %c0_i32 = arith.constant 0 : i32
    %c0_i32_0 = arith.constant 0 : i32
    return %c0_i32, %arg0 : i32, i32
  }
  func.func @transform_2(%arg0: i32) -> (i32, i32) {
    %c0_i32 = arith.constant 0 : i32
    %c0_i32_0 = arith.constant 0 : i32
    %c0_i32_1 = arith.constant 0 : i32
    return %c0_i32, %c0_i32_0 : i32, i32
  }
  func.func @transform_3(%arg0: i32) -> (i32, i32) {
    %c0_i32 = arith.constant 0 : i32
    %c0_i32_0 = arith.constant 0 : i32
    return %c0_i32, %arg0 : i32, i32
  }
}

module attributes {stable_mosaic.version = 11 : i64} {
  func.func @_gn_elu_kernel(%arg0: i32, %arg1: memref<8x128xf32, #tpu.memory_space<vmem>>, %arg2: memref<8x1xf32, #tpu.memory_space<vmem>>, %arg3: memref<8x1xf32, #tpu.memory_space<vmem>>, %arg4: memref<8x128xf32, #tpu.memory_space<vmem>>) attributes {dimension_semantics = [#tpu.dimension_semantics<parallel>], iteration_bounds = array<i64: 1>, scalar_prefetch = 0 : i64, scratch_operands = 0 : i64, tpu.core_type = #tpu.core_type<tc>, window_params = [{transform_indices = @transform_0, window_bounds = array<i64: 8, 128>}, {transform_indices = @transform_1, window_bounds = array<i64: 8, 1>}, {transform_indices = @transform_2, window_bounds = array<i64: 8, 1>}, {transform_indices = @transform_3, window_bounds = array<i64: 8, 128>}]} {
    %c0 = arith.constant 0 : index
    %c0_0 = arith.constant 0 : index
    %0 = vector.load %arg1[%c0, %c0_0] : memref<8x128xf32, #tpu.memory_space<vmem>>, vector<8x128xf32>
    %cst = arith.constant dense<0.000000e+00> : vector<8xf32>
    %1 = vector.multi_reduction <add>, %0, %cst [1] : vector<8x128xf32> to vector<8xf32>
    %2 = vector.shape_cast %1 : vector<8xf32> to vector<8x1xf32>
    %cst_1 = arith.constant 1.280000e+02 : f32
    %3 = vector.broadcast %cst_1 : f32 to vector<8x1xf32>
    %4 = arith.divf %2, %3 : vector<8x1xf32>
    %5 = vector.broadcast %4 : vector<8x1xf32> to vector<8x128xf32>
    %6 = arith.subf %0, %5 : vector<8x128xf32>
    %7 = arith.mulf %6, %6 : vector<8x128xf32>
    %cst_2 = arith.constant dense<0.000000e+00> : vector<8xf32>
    %8 = vector.multi_reduction <add>, %7, %cst_2 [1] : vector<8x128xf32> to vector<8xf32>
    %9 = vector.shape_cast %8 : vector<8xf32> to vector<8x1xf32>
    %cst_3 = arith.constant 1.280000e+02 : f32
    %10 = vector.broadcast %cst_3 : f32 to vector<8x1xf32>
    %11 = arith.divf %9, %10 : vector<8x1xf32>
    %cst_4 = arith.constant 9.99999974E-6 : f32
    %12 = vector.broadcast %cst_4 : f32 to vector<8x1xf32>
    %13 = arith.addf %11, %12 : vector<8x1xf32>
    %14 = math.rsqrt %13 : vector<8x1xf32>
    %15 = vector.broadcast %14 : vector<8x1xf32> to vector<8x128xf32>
    %16 = arith.mulf %6, %15 : vector<8x128xf32>
    %c0_5 = arith.constant 0 : index
    %c0_6 = arith.constant 0 : index
    %17 = vector.load %arg2[%c0_5, %c0_6] : memref<8x1xf32, #tpu.memory_space<vmem>>, vector<8x1xf32>
    %c0_7 = arith.constant 0 : index
    %c0_8 = arith.constant 0 : index
    %18 = vector.load %arg3[%c0_7, %c0_8] : memref<8x1xf32, #tpu.memory_space<vmem>>, vector<8x1xf32>
    %19 = vector.broadcast %17 : vector<8x1xf32> to vector<8x128xf32>
    %20 = arith.mulf %16, %19 : vector<8x128xf32>
    %21 = vector.broadcast %18 : vector<8x1xf32> to vector<8x128xf32>
    %22 = arith.addf %20, %21 : vector<8x128xf32>
    %cst_9 = arith.constant 0.000000e+00 : f32
    %23 = vector.broadcast %cst_9 : f32 to vector<8x128xf32>
    %24 = arith.cmpf ogt, %22, %23 : vector<8x128xf32>
    %cst_10 = arith.constant 0.000000e+00 : f32
    %25 = vector.broadcast %cst_10 : f32 to vector<8x128xf32>
    %26 = arith.minimumf %22, %25 : vector<8x128xf32>
    %27 = math.exp %26 : vector<8x128xf32>
    %cst_11 = arith.constant 1.000000e+00 : f32
    %28 = vector.broadcast %cst_11 : f32 to vector<8x128xf32>
    %29 = arith.subf %27, %28 : vector<8x128xf32>
    %30 = arith.select %24, %22, %29 : vector<8x128xi1>, vector<8x128xf32>
    %c0_12 = arith.constant 0 : index
    %c0_13 = arith.constant 0 : index
    %31 = vector.load %arg4[%c0_12, %c0_13] : memref<8x128xf32, #tpu.memory_space<vmem>>, vector<8x128xf32>
    tpu.vector_store %arg4[%c0_12, %c0_13], %30 {strides = array<i32>} : memref<8x128xf32, #tpu.memory_space<vmem>>, vector<8x128xf32>,
    return
  }
  func.func @transform_0(%arg0: i32) -> (i32, i32) {
    %c0_i32 = arith.constant 0 : i32
    %c0_i32_0 = arith.constant 0 : i32
    return %arg0, %c0_i32 : i32, i32
  }
  func.func @transform_1(%arg0: i32) -> (i32, i32) {
    %c0_i32 = arith.constant 0 : i32
    %c0_i32_0 = arith.constant 0 : i32
    return %arg0, %c0_i32 : i32, i32
  }
  func.func @transform_2(%arg0: i32) -> (i32, i32) {
    %c0_i32 = arith.constant 0 : i32
    %c0_i32_0 = arith.constant 0 : i32
    return %arg0, %c0_i32 : i32, i32
  }
  func.func @transform_3(%arg0: i32) -> (i32, i32) {
    %c0_i32 = arith.constant 0 : i32
    %c0_i32_0 = arith.constant 0 : i32
    return %arg0, %c0_i32 : i32, i32
  }
}

module attributes {stable_mosaic.version = 11 : i64} {
  func.func @_matmul_t_bias_kernel(%arg0: i32, %arg1: memref<8x32xbf16, #tpu.memory_space<vmem>>, %arg2: memref<32x512xbf16, #tpu.memory_space<vmem>>, %arg3: memref<8x1xf32, #tpu.memory_space<vmem>>, %arg4: memref<8x512xf32, #tpu.memory_space<vmem>>) attributes {dimension_semantics = [#tpu.dimension_semantics<parallel>], iteration_bounds = array<i64: 2>, scalar_prefetch = 0 : i64, scratch_operands = 0 : i64, tpu.core_type = #tpu.core_type<tc>, window_params = [{pipeline_mode = #tpu.pipeline_mode<synchronous>, transform_indices = @transform_0, window_bounds = array<i64: 8, 32>}, {transform_indices = @transform_1, window_bounds = array<i64: 32, 512>}, {pipeline_mode = #tpu.pipeline_mode<synchronous>, transform_indices = @transform_2, window_bounds = array<i64: 8, 1>}, {transform_indices = @transform_3, window_bounds = array<i64: 8, 512>}]} {
    %c0 = arith.constant 0 : index
    %c0_0 = arith.constant 0 : index
    %0 = vector.load %arg1[%c0, %c0_0] : memref<8x32xbf16, #tpu.memory_space<vmem>>, vector<8x32xbf16>
    %c0_1 = arith.constant 0 : index
    %c0_2 = arith.constant 0 : index
    %1 = vector.load %arg2[%c0_1, %c0_2] : memref<32x512xbf16, #tpu.memory_space<vmem>>, vector<32x512xbf16>
    %cst = arith.constant dense<0.000000e+00> : vector<8x512xf32>
    %2 = tpu.matmul %0, %1, %cst {dimension_numbers = #tpu.dot_dimension_numbers<[1], [0], [0], [1], [0, 0, 1, 1], [], []>} : vector<8x32xbf16>, vector<32x512xbf16>, vector<8x512xf32> -> vector<8x512xf32>
    %c0_3 = arith.constant 0 : index
    %c0_4 = arith.constant 0 : index
    %3 = vector.load %arg3[%c0_3, %c0_4] : memref<8x1xf32, #tpu.memory_space<vmem>>, vector<8x1xf32>
    %4 = vector.broadcast %3 : vector<8x1xf32> to vector<8x512xf32>
    %5 = arith.addf %2, %4 : vector<8x512xf32>
    %c0_5 = arith.constant 0 : index
    %c0_6 = arith.constant 0 : index
    %6 = vector.load %arg4[%c0_5, %c0_6] : memref<8x512xf32, #tpu.memory_space<vmem>>, vector<8x512xf32>
    tpu.vector_store %arg4[%c0_5, %c0_6], %5 {strides = array<i32>} : memref<8x512xf32, #tpu.memory_space<vmem>>, vector<8x512xf32>,
    return
  }
  func.func @transform_0(%arg0: i32) -> (i32, i32) {
    %c0_i32 = arith.constant 0 : i32
    %c0_i32_0 = arith.constant 0 : i32
    %c0_i32_1 = arith.constant 0 : i32
    return %c0_i32, %c0_i32_0 : i32, i32
  }
  func.func @transform_1(%arg0: i32) -> (i32, i32) {
    %c0_i32 = arith.constant 0 : i32
    %c0_i32_0 = arith.constant 0 : i32
    return %c0_i32, %arg0 : i32, i32
  }
  func.func @transform_2(%arg0: i32) -> (i32, i32) {
    %c0_i32 = arith.constant 0 : i32
    %c0_i32_0 = arith.constant 0 : i32
    %c0_i32_1 = arith.constant 0 : i32
    return %c0_i32, %c0_i32_0 : i32, i32
  }
  func.func @transform_3(%arg0: i32) -> (i32, i32) {
    %c0_i32 = arith.constant 0 : i32
    %c0_i32_0 = arith.constant 0 : i32
    return %c0_i32, %arg0 : i32, i32
  }
}

module attributes {stable_mosaic.version = 11 : i64} {
  func.func @_matmul_t_bias_kernel(%arg0: i32, %arg1: memref<4x576xbf16, #tpu.memory_space<vmem>>, %arg2: memref<576x128xbf16, #tpu.memory_space<vmem>>, %arg3: memref<4x1xf32, #tpu.memory_space<vmem>>, %arg4: memref<4x128xf32, #tpu.memory_space<vmem>>) attributes {dimension_semantics = [#tpu.dimension_semantics<parallel>], iteration_bounds = array<i64: 1>, scalar_prefetch = 0 : i64, scratch_operands = 0 : i64, tpu.core_type = #tpu.core_type<tc>, window_params = [{pipeline_mode = #tpu.pipeline_mode<synchronous>, transform_indices = @transform_0, window_bounds = array<i64: 4, 576>}, {transform_indices = @transform_1, window_bounds = array<i64: 576, 128>}, {pipeline_mode = #tpu.pipeline_mode<synchronous>, transform_indices = @transform_2, window_bounds = array<i64: 4, 1>}, {transform_indices = @transform_3, window_bounds = array<i64: 4, 128>}]} {
    %c0 = arith.constant 0 : index
    %c0_0 = arith.constant 0 : index
    %0 = vector.load %arg1[%c0, %c0_0] : memref<4x576xbf16, #tpu.memory_space<vmem>>, vector<4x576xbf16>
    %c0_1 = arith.constant 0 : index
    %c0_2 = arith.constant 0 : index
    %1 = vector.load %arg2[%c0_1, %c0_2] : memref<576x128xbf16, #tpu.memory_space<vmem>>, vector<576x128xbf16>
    %cst = arith.constant dense<0.000000e+00> : vector<4x128xf32>
    %2 = tpu.matmul %0, %1, %cst {dimension_numbers = #tpu.dot_dimension_numbers<[1], [0], [0], [1], [0, 0, 1, 1], [], []>} : vector<4x576xbf16>, vector<576x128xbf16>, vector<4x128xf32> -> vector<4x128xf32>
    %c0_3 = arith.constant 0 : index
    %c0_4 = arith.constant 0 : index
    %3 = vector.load %arg3[%c0_3, %c0_4] : memref<4x1xf32, #tpu.memory_space<vmem>>, vector<4x1xf32>
    %4 = vector.broadcast %3 : vector<4x1xf32> to vector<4x128xf32>
    %5 = arith.addf %2, %4 : vector<4x128xf32>
    %c0_5 = arith.constant 0 : index
    %c0_6 = arith.constant 0 : index
    %6 = vector.load %arg4[%c0_5, %c0_6] : memref<4x128xf32, #tpu.memory_space<vmem>>, vector<4x128xf32>
    tpu.vector_store %arg4[%c0_5, %c0_6], %5 {strides = array<i32>} : memref<4x128xf32, #tpu.memory_space<vmem>>, vector<4x128xf32>,
    return
  }
  func.func @transform_0(%arg0: i32) -> (i32, i32) {
    %c0_i32 = arith.constant 0 : i32
    %c0_i32_0 = arith.constant 0 : i32
    %c0_i32_1 = arith.constant 0 : i32
    return %c0_i32, %c0_i32_0 : i32, i32
  }
  func.func @transform_1(%arg0: i32) -> (i32, i32) {
    %c0_i32 = arith.constant 0 : i32
    %c0_i32_0 = arith.constant 0 : i32
    return %c0_i32, %arg0 : i32, i32
  }
  func.func @transform_2(%arg0: i32) -> (i32, i32) {
    %c0_i32 = arith.constant 0 : i32
    %c0_i32_0 = arith.constant 0 : i32
    %c0_i32_1 = arith.constant 0 : i32
    return %c0_i32, %c0_i32_0 : i32, i32
  }
  func.func @transform_3(%arg0: i32) -> (i32, i32) {
    %c0_i32 = arith.constant 0 : i32
    %c0_i32_0 = arith.constant 0 : i32
    return %c0_i32, %arg0 : i32, i32
  }
}

module attributes {stable_mosaic.version = 11 : i64} {
  func.func @_gn_elu_kernel(%arg0: i32, %arg1: memref<8x64xf32, #tpu.memory_space<vmem>>, %arg2: memref<8x1xf32, #tpu.memory_space<vmem>>, %arg3: memref<8x1xf32, #tpu.memory_space<vmem>>, %arg4: memref<8x64xf32, #tpu.memory_space<vmem>>) attributes {dimension_semantics = [#tpu.dimension_semantics<parallel>], iteration_bounds = array<i64: 1>, scalar_prefetch = 0 : i64, scratch_operands = 0 : i64, tpu.core_type = #tpu.core_type<tc>, window_params = [{transform_indices = @transform_0, window_bounds = array<i64: 8, 64>}, {transform_indices = @transform_1, window_bounds = array<i64: 8, 1>}, {transform_indices = @transform_2, window_bounds = array<i64: 8, 1>}, {transform_indices = @transform_3, window_bounds = array<i64: 8, 64>}]} {
    %c0 = arith.constant 0 : index
    %c0_0 = arith.constant 0 : index
    %0 = vector.load %arg1[%c0, %c0_0] : memref<8x64xf32, #tpu.memory_space<vmem>>, vector<8x64xf32>
    %cst = arith.constant dense<0.000000e+00> : vector<8xf32>
    %1 = vector.multi_reduction <add>, %0, %cst [1] : vector<8x64xf32> to vector<8xf32>
    %2 = vector.shape_cast %1 : vector<8xf32> to vector<8x1xf32>
    %cst_1 = arith.constant 6.400000e+01 : f32
    %3 = vector.broadcast %cst_1 : f32 to vector<8x1xf32>
    %4 = arith.divf %2, %3 : vector<8x1xf32>
    %5 = vector.broadcast %4 : vector<8x1xf32> to vector<8x64xf32>
    %6 = arith.subf %0, %5 : vector<8x64xf32>
    %7 = arith.mulf %6, %6 : vector<8x64xf32>
    %cst_2 = arith.constant dense<0.000000e+00> : vector<8xf32>
    %8 = vector.multi_reduction <add>, %7, %cst_2 [1] : vector<8x64xf32> to vector<8xf32>
    %9 = vector.shape_cast %8 : vector<8xf32> to vector<8x1xf32>
    %cst_3 = arith.constant 6.400000e+01 : f32
    %10 = vector.broadcast %cst_3 : f32 to vector<8x1xf32>
    %11 = arith.divf %9, %10 : vector<8x1xf32>
    %cst_4 = arith.constant 9.99999974E-6 : f32
    %12 = vector.broadcast %cst_4 : f32 to vector<8x1xf32>
    %13 = arith.addf %11, %12 : vector<8x1xf32>
    %14 = math.rsqrt %13 : vector<8x1xf32>
    %15 = vector.broadcast %14 : vector<8x1xf32> to vector<8x64xf32>
    %16 = arith.mulf %6, %15 : vector<8x64xf32>
    %c0_5 = arith.constant 0 : index
    %c0_6 = arith.constant 0 : index
    %17 = vector.load %arg2[%c0_5, %c0_6] : memref<8x1xf32, #tpu.memory_space<vmem>>, vector<8x1xf32>
    %c0_7 = arith.constant 0 : index
    %c0_8 = arith.constant 0 : index
    %18 = vector.load %arg3[%c0_7, %c0_8] : memref<8x1xf32, #tpu.memory_space<vmem>>, vector<8x1xf32>
    %19 = vector.broadcast %17 : vector<8x1xf32> to vector<8x64xf32>
    %20 = arith.mulf %16, %19 : vector<8x64xf32>
    %21 = vector.broadcast %18 : vector<8x1xf32> to vector<8x64xf32>
    %22 = arith.addf %20, %21 : vector<8x64xf32>
    %cst_9 = arith.constant 0.000000e+00 : f32
    %23 = vector.broadcast %cst_9 : f32 to vector<8x64xf32>
    %24 = arith.cmpf ogt, %22, %23 : vector<8x64xf32>
    %cst_10 = arith.constant 0.000000e+00 : f32
    %25 = vector.broadcast %cst_10 : f32 to vector<8x64xf32>
    %26 = arith.minimumf %22, %25 : vector<8x64xf32>
    %27 = math.exp %26 : vector<8x64xf32>
    %cst_11 = arith.constant 1.000000e+00 : f32
    %28 = vector.broadcast %cst_11 : f32 to vector<8x64xf32>
    %29 = arith.subf %27, %28 : vector<8x64xf32>
    %30 = arith.select %24, %22, %29 : vector<8x64xi1>, vector<8x64xf32>
    %c0_12 = arith.constant 0 : index
    %c0_13 = arith.constant 0 : index
    %31 = vector.load %arg4[%c0_12, %c0_13] : memref<8x64xf32, #tpu.memory_space<vmem>>, vector<8x64xf32>
    tpu.vector_store %arg4[%c0_12, %c0_13], %30 {strides = array<i32>} : memref<8x64xf32, #tpu.memory_space<vmem>>, vector<8x64xf32>,
    return
  }
  func.func @transform_0(%arg0: i32) -> (i32, i32) {
    %c0_i32 = arith.constant 0 : i32
    %c0_i32_0 = arith.constant 0 : i32
    return %arg0, %c0_i32 : i32, i32
  }
  func.func @transform_1(%arg0: i32) -> (i32, i32) {
    %c0_i32 = arith.constant 0 : i32
    %c0_i32_0 = arith.constant 0 : i32
    return %arg0, %c0_i32 : i32, i32
  }
  func.func @transform_2(%arg0: i32) -> (i32, i32) {
    %c0_i32 = arith.constant 0 : i32
    %c0_i32_0 = arith.constant 0 : i32
    return %arg0, %c0_i32 : i32, i32
  }
  func.func @transform_3(%arg0: i32) -> (i32, i32) {
    %c0_i32 = arith.constant 0 : i32
    %c0_i32_0 = arith.constant 0 : i32
    return %arg0, %c0_i32 : i32, i32
  }
}

</mosaic_0001>

<bundles_post_ra>
// kernel: down_pixel_3d_layer_axis.6
= control target key start
LH: loop header
LB: loop body
LE: loop exit
PB: predicated region body
PF: predicated region fallthrough
CT: control target
= control target key end

     0   :  { %s514_s12 = smov 0   ;;  %s516_s13 = smov 0   ;;  %s572_s0 = inlined_call_operand.vmem [shape: bf16[8,32], index: 0, kind: input, shape index: {}]   ;;  %s573_s1 = inlined_call_operand.vmem [shape: bf16[32,2048], index: 1, kind: input, shape index: {}]   ;;  %s574_s2 = inlined_call_operand.vmem [shape: f32[8,1], index: 2, kind: input, shape index: {}]   ;;  %s575_s3 = inlined_call_operand.vmem [shape: f32[8,2048], index: 3, kind: output, shape index: {}]  }
   0x1   :  { %s518_s14 = smov 0  }
   0x2 LB: > { %s385_s15 = sadd.s32 4294967295, %s491_s14   ;;  %s531_s16 = sadd.s32 1, %s491_s14   ;;  %s491_s14 = sphi %s518_s14, %s578_s14   ;;  %s487_s13 = sphi %s516_s13, %s577_s13   ;;  %s483_s12 = sphi %s514_s12, %s576_s12  }
   0x3   : > { %s38_s17 = ssub.s32 %s491_s14, %s531_s16  ;;  %s41_s18 = sadd.s32 1, %s487_s13 }
   0x4   : > { %p39_p0 = scmp.eq.s32.totalorder %s38_s17, 0  ;;  %p48_p1 = scmp.ne.s32.totalorder %s487_s13, %s483_s12 }
   0x5   : > { %p49_p2 = scmp.eq.s32.totalorder %s491_s14, 0  ;;  %p388_p4 = scmp.ge.s32.totalorder %s491_s14, 4 }
   0x6   : > { %s540_s19 = scalar_select %p39_p0, %s487_s13, %s41_s18  }
   0x7   : > { %p50_p3 = por %p49_p2, %p48_p1  ;;  %127 = sbr.rel (%p388_p4) target bundleno = 24 (0x18), region = 24 }
   0xc   : > { %130 = sbr.rel (!%p50_p3) target bundleno = 24 (0x18), region = 28  ;;  %s132_s20 = sand.u32 (%p50_p3), 1, %s487_s13  }
   0xd   : > { %s434_s21 = sshll.u32 (%p50_p3), %s491_s14, 4  ;;  %s389_s22 = sshll.u32 (%p50_p3), %s132_s20, 6 }
   0xe   : > { %s137_s25 = scalar_lea.vmem (%p50_p3), %s573_s1, %s434_s21  ;;  %s134_s26 = scalar_lea.vmem (%p50_p3), [#allocation2], %s389_s22 }
   0xf   : > { %v150_v0 = vld [vmem:[%s137_s25] sm:$0xff] (%p50_p3)  ;;  %v152_v1 = vld [vmem:[%s137_s25 + $0x8] sm:$0xff] (%p50_p3) }
  0x10   : > { %v154_v2 = vld [vmem:[%s137_s25 + $0x40] sm:$0xff] (%p50_p3)  ;;  %151 = vst [vmem:[%s134_s26] sm:$0xff] (%p50_p3), %v150_v0  ;;  %v156_v3 = vld [vmem:[%s137_s25 + $0x48] sm:$0xff] (%p50_p3) }
  0x11   : > { %153 = vst [vmem:[%s134_s26 + $0x8] sm:$0xff] %v152_v1  ;;  %v158_v4 = vld [vmem:[%s137_s25 + $0x80] sm:$0xff]  ;;  %v160_v5 = vld [vmem:[%s137_s25 + $0x88] sm:$0xff] }
  0x12   : > { %155 = vst [vmem:[%s134_s26 + $0x10] sm:$0xff] %v154_v2  ;;  %v162_v6 = vld [vmem:[%s137_s25 + $0xc0] sm:$0xff]  ;;  %v164_v7 = vld [vmem:[%s137_s25 + $0xc8] sm:$0xff] }
  0x13   : > { %157 = vst [vmem:[%s134_s26 + $0x18] sm:$0xff] %v156_v3 }
  0x14   : > { %159 = vst [vmem:[%s134_s26 + $0x20] sm:$0xff] %v158_v4 }
  0x15   : > { %161 = vst [vmem:[%s134_s26 + $0x28] sm:$0xff] %v160_v5 }
  0x16   : > { %163 = vst [vmem:[%s134_s26 + $0x30] sm:$0xff] %v162_v6 }
  0x17   : > { %165 = vst [vmem:[%s134_s26 + $0x38] sm:$0xff] %v164_v7 }
  0x18 PF: > { %p392_p5 = scmp.ge.s32.totalorder %s491_s14, 1  ;;  %p170_p6 = scmp.lt.s32.totalorder %s491_s14, 5 }
  0x1a   : > { %p171_p7 = pnand %p392_p5, %p170_p6 }
  0x1b   : > { %s177_s27 = sand.u32 (!%p171_p7), 1, %s483_s12   ;;  %s394_s7 = sshll.u32 (!%p171_p7), %s385_s15, 2 }
  0x1c   : > { %174 = sbr.rel (%p171_p7) target bundleno = 185 (0xb9), region = 51  ;;  %s393_s30 = sshll.u32 (!%p171_p7), %s177_s27, 6 }
  0x1d   : > { %s179_s4 = scalar_lea.vmem (!%p171_p7), [#allocation2], %s393_s30  ;;  %p202_p8 = scmp.lt.s32.totalorder (!%p171_p7), %s394_s7, 15 }
  0x21   : > { %v217_v8 = vld [vmem:[%s574_s2] sm:$0xff]  ;;  %v493_v9 = vmov 0   ;;  %v441_v11 = vld [vmem:[%s179_s4 + $0x2c] sm:$0xf0]  ;;  %v416_v14 = vld [vmem:[%s179_s4 + $0x30] sm:$0xf0] }
  0x22   : > { %468 = vset.pattern.permute.xlu0 %v493_v9  ;;  %v414_v10 = vld [vmem:[%s179_s4 + $0x20] sm:$0xf]  ;;  %v439_v12 = vld [vmem:[%s179_s4 + $0x24] sm:$0xf]  ;;  %v422_v15 = vld [vmem:[%s179_s4 + $0x28] sm:$0xf] }
  0x23   : > { %220 = vperm.xlu0 %468, %v217_v8   ;;  %v415_v13 = vor.u32 %v441_v11, %v414_v10  ;;  %v442_v16 = vld [vmem:[%s179_s4 + $0x34] sm:$0xf0]  ;;  %v419_v17 = vor.u32 %v439_v12, %v416_v14  ;;  %v440_v19 = vld [vmem:[%s179_s4 + $0x2c] sm:$0xf]  ;;  %v424_v20 = vld [vmem:[%s179_s4 + $0x38] sm:$0xf0] }
  0x24   : > { %v423_v18 = vor.u32 %v442_v16, %v422_v15  ;;  %v398_v21 = vld [vmem:[%s179_s4] sm:$0xf]  ;;  %v427_v22 = vor.u32 %v440_v19, %v424_v20  ;;  %v437_v23 = vld [vmem:[%s179_s4 + $0xc] sm:$0xf0]  ;;  %v435_v24 = vld [vmem:[%s179_s4 + $0x4] sm:$0xf] }
  0x25   : > { %273 = vmatpush.bf16.msra.mxu0 %v415_v13  ;;  %v400_v25 = vld [vmem:[%s179_s4 + $0x10] sm:$0xf0]  ;;  %286 = vmatpush.bf16.msra.mxu1 %v419_v17  ;;  %v399_v26 = vor.u32 %v437_v23, %v398_v21  ;;  %v406_v28 = vld [vmem:[%s179_s4 + $0x8] sm:$0xf]  ;;  %v438_v29 = vld [vmem:[%s179_s4 + $0x14] sm:$0xf0] }
  0x26   : > { %299 = vmatpush.bf16.msra.mxu2 %v423_v18  ;;  %v403_v27 = vor.u32 %v435_v24, %v400_v25  ;;  %v436_v30 = vld [vmem:[%s179_s4 + $0xc] sm:$0xf]  ;;  %312 = vmatpush.bf16.msra.mxu3 %v427_v22  ;;  %v407_v31 = vor.u32 %v438_v29, %v406_v28  ;;  %v408_v32 = vld [vmem:[%s179_s4 + $0x18] sm:$0xf0]  ;;  %v208_v34 = vld [vmem:[%s572_s0] sm:$0xf] }
  0x27   : > { %v411_v33 = vor.u32 %v436_v30, %v408_v32  ;;  %vm263_vm0 = vcmask 261120   ;;  %s580_s7 = smov (!%p202_p8, %s394_s7), 15 }
  0x28   : > { %s395_s8 = sshll.u32 %s580_s7, 3 }
  0x29   : > { %274 = vmatpush.bf16.msra.mxu0 %v399_v26  ;;  %287 = vmatpush.bf16.msra.mxu1 %v403_v27  ;;  %s205_s11 = scalar_lea.vmem %s575_s3, %s395_s8 }
  0x2a   : > { %300 = vmatpush.bf16.msra.mxu2 %v407_v31  ;;  %313 = vmatpush.bf16.msra.mxu3 %v411_v33 }
  0x2c   : > { %428 = vmatmul.msk.bf16.vlgmr.msra.gmra.mxu0 %vm263_vm0, %v208_v34  ;;  %429 = vmatmul.msk.bf16.vlgmr.msra.gmra.mxu1 %vm263_vm0, %v208_v34 }
  0x2d   : > { %430 = vmatmul.msk.bf16.vlgmr.msra.gmra.mxu2 %vm263_vm0, %v208_v34  ;;  %431 = vmatmul.msk.bf16.vlgmr.msra.gmra.mxu3 %vm263_vm0, %v208_v34 }
  0x95   : > { %v221_v35 = vpop.permute.xlu0 %220 }
  0xa9   : > { %v276_v36 = vpop.f32.mrf.mxu0  ;;  %v289_v37 = vpop.f32.mrf.mxu1 }
  0xaa   : > { %v277_v38 = vadd.f32 %v276_v36, %v221_v35  ;;  %v290_v39 = vadd.f32 %v289_v37, %v221_v35 }
  0xac   : > { %319 = vst [vmem:[%s205_s11] sm:$0xff] %v277_v38 }
  0xad   : > { %320 = vst [vmem:[%s205_s11 + $0x8] sm:$0xff] %v290_v39 }
  0xb0   : > { %v302_v40 = vpop.f32.mrf.mxu2  ;;  %v315_v42 = vpop.f32.mrf.mxu3 }
  0xb1   : > { %v303_v41 = vadd.f32 %v302_v40, %v221_v35  ;;  %v278_v43 = vpop.f32.mrf.mxu0  ;;  %v316_v44 = vadd.f32 %v315_v42, %v221_v35  ;;  %v291_v45 = vpop.f32.mrf.mxu1 }
  0xb3   : > { %321 = vst [vmem:[%s205_s11 + $0x10] sm:$0xff] %v303_v41 }
  0xb4   : > { %322 = vst [vmem:[%s205_s11 + $0x18] sm:$0xff] %v316_v44 }
  0xb8   : > { %v304_v46 = vpop.f32.mrf.mxu2  ;;  %v317_v47 = vpop.f32.mrf.mxu3 }
  0xb9 PF: > { %p10_p9 = scmp.ge.s32.totalorder %s531_s16, 6   ;;  %s576_s12 = smov %s487_s13 }
  0xba   : > { %s577_s13 = smov %s540_s19  ;;  %s578_s14 = smov %s531_s16 }
  0xbb   :  { %12 = sbr.rel (!%p10_p9) target bundleno = 2 (0x2), region = 90 }

// kernel: down_pixel_3d_layer_axis.7
= control target key start
LH: loop header
LB: loop body
LE: loop exit
PB: predicated region body
PF: predicated region fallthrough
CT: control target
= control target key end

     0   :  { %vm469_vm0 = vcmask 523264   ;;  %vm605_vm1 = vcmask 1043456   ;;  %s1464_s1 = inlined_call_operand.vmem [shape: bf16[576,256], index: 1, kind: input, shape index: {}]   ;;  %s1465_s0 = inlined_call_operand.vmem [shape: bf16[4,576], index: 0, kind: input, shape index: {}]   ;;  %s1466_s2 = inlined_call_operand.vmem [shape: f32[4,1], index: 2, kind: input, shape index: {}]   ;;  %s1467_s3 = inlined_call_operand.vmem [shape: f32[4,256], index: 3, kind: output, shape index: {}]  }
   0x1   :  { %v671_v0 = vld [vmem:[%s1464_s1 + $0x70] sm:$0xf]  ;;  %v918_v1 = vld [vmem:[%s1464_s1 + $0x74] sm:$0xf0]  ;;  %v663_v11 = vld [vmem:[%s1464_s1 + $0x60] sm:$0xf] }
   0x2   :  { %v735_v2 = vld [vmem:[%s1464_s1 + $0xf0] sm:$0xf]  ;;  %v672_v3 = vor.u32 %v918_v1, %v671_v0  ;;  %v934_v4 = vld [vmem:[%s1464_s1 + $0xf4] sm:$0xf0]  ;;  %v916_v13 = vld [vmem:[%s1464_s1 + $0x64] sm:$0xf0] }
   0x3   :  { %v799_v5 = vld [vmem:[%s1464_s1 + $0x170] sm:$0xf]  ;;  %v950_v6 = vld [vmem:[%s1464_s1 + $0x174] sm:$0xf0]  ;;  %v736_v7 = vor.u32 %v934_v4, %v735_v2  ;;  %v727_v14 = vld [vmem:[%s1464_s1 + $0xe0] sm:$0xf]  ;;  %v664_v16 = vor.u32 %v916_v13, %v663_v11 }
   0x4   :  { %v800_v8 = vor.u32 %v950_v6, %v799_v5  ;;  %v863_v9 = vld [vmem:[%s1464_s1 + $0x1f0] sm:$0xf]  ;;  %v966_v10 = vld [vmem:[%s1464_s1 + $0x1f4] sm:$0xf0]  ;;  %472 = vmatpush.bf16.msra.mxu0 %v672_v3  ;;  %v932_v15 = vld [vmem:[%s1464_s1 + $0xe4] sm:$0xf0] }
   0x5   :  { %v864_v12 = vor.u32 %v966_v10, %v863_v9  ;;  %485 = vmatpush.bf16.msra.mxu1 %v736_v7  ;;  %v728_v17 = vor.u32 %v932_v15, %v727_v14  ;;  %v791_v18 = vld [vmem:[%s1464_s1 + $0x160] sm:$0xf]  ;;  %v948_v19 = vld [vmem:[%s1464_s1 + $0x164] sm:$0xf0]  ;;  %v655_v23 = vld [vmem:[%s1464_s1 + $0x50] sm:$0xf] }
   0x6   :  { %498 = vmatpush.bf16.msra.mxu2 %v800_v8  ;;  %v855_v20 = vld [vmem:[%s1464_s1 + $0x1e0] sm:$0xf]  ;;  %v792_v21 = vor.u32 %v948_v19, %v791_v18  ;;  %v964_v22 = vld [vmem:[%s1464_s1 + $0x1e4] sm:$0xf0]  ;;  %v914_v24 = vld [vmem:[%s1464_s1 + $0x54] sm:$0xf0] }
   0x7   :  { %511 = vmatpush.bf16.msra.mxu3 %v864_v12  ;;  %v856_v25 = vor.u32 %v964_v22, %v855_v20  ;;  %v719_v26 = vld [vmem:[%s1464_s1 + $0xd0] sm:$0xf]  ;;  %v930_v27 = vld [vmem:[%s1464_s1 + $0xd4] sm:$0xf0]  ;;  %v656_v29 = vor.u32 %v914_v24, %v655_v23  ;;  %v647_v35 = vld [vmem:[%s1464_s1 + $0x40] sm:$0xf] }
   0x8   :  { %v783_v28 = vld [vmem:[%s1464_s1 + $0x150] sm:$0xf]  ;;  %473 = vmatpush.bf16.msra.mxu0 %v664_v16  ;;  %v946_v30 = vld [vmem:[%s1464_s1 + $0x154] sm:$0xf0]  ;;  %v720_v33 = vor.u32 %v930_v27, %v719_v26  ;;  %v912_v36 = vld [vmem:[%s1464_s1 + $0x44] sm:$0xf0] }
   0x9   :  { %v847_v31 = vld [vmem:[%s1464_s1 + $0x1d0] sm:$0xf]  ;;  %v962_v32 = vld [vmem:[%s1464_s1 + $0x1d4] sm:$0xf0]  ;;  %486 = vmatpush.bf16.msra.mxu1 %v728_v17  ;;  %v784_v34 = vor.u32 %v946_v30, %v783_v28  ;;  %v711_v37 = vld [vmem:[%s1464_s1 + $0xc0] sm:$0xf]  ;;  %v648_v44 = vor.u32 %v912_v36, %v647_v35 }
   0xa   :  { %499 = vmatpush.bf16.msra.mxu2 %v792_v21  ;;  %v848_v38 = vor.u32 %v962_v32, %v847_v31  ;;  %v928_v39 = vld [vmem:[%s1464_s1 + $0xc4] sm:$0xf0]  ;;  %v775_v40 = vld [vmem:[%s1464_s1 + $0x140] sm:$0xf]  ;;  %v639_v47 = vld [vmem:[%s1464_s1 + $0x30] sm:$0xf] }
   0xb   :  { %512 = vmatpush.bf16.msra.mxu3 %v856_v25  ;;  %v944_v41 = vld [vmem:[%s1464_s1 + $0x144] sm:$0xf0]  ;;  %v839_v42 = vld [vmem:[%s1464_s1 + $0x1c0] sm:$0xf]  ;;  %v712_v45 = vor.u32 %v928_v39, %v711_v37  ;;  %v910_v48 = vld [vmem:[%s1464_s1 + $0x34] sm:$0xf0] }
   0xc   :  { %v960_v43 = vld [vmem:[%s1464_s1 + $0x1c4] sm:$0xf0]  ;;  %474 = vmatpush.bf16.msra.mxu0 %v656_v29  ;;  %v776_v46 = vor.u32 %v944_v41, %v775_v40  ;;  %v703_v49 = vld [vmem:[%s1464_s1 + $0xb0] sm:$0xf]  ;;  %v926_v51 = vld [vmem:[%s1464_s1 + $0xb4] sm:$0xf0]  ;;  %v640_v56 = vor.u32 %v910_v48, %v639_v47 }
   0xd   :  { %487 = vmatpush.bf16.msra.mxu1 %v720_v33  ;;  %v840_v50 = vor.u32 %v960_v43, %v839_v42  ;;  %v767_v52 = vld [vmem:[%s1464_s1 + $0x130] sm:$0xf]  ;;  %v942_v53 = vld [vmem:[%s1464_s1 + $0x134] sm:$0xf0]  ;;  %v704_v57 = vor.u32 %v926_v51, %v703_v49  ;;  %v631_v59 = vld [vmem:[%s1464_s1 + $0x20] sm:$0xf] }
   0xe   :  { %500 = vmatpush.bf16.msra.mxu2 %v784_v34  ;;  %v831_v54 = vld [vmem:[%s1464_s1 + $0x1b0] sm:$0xf]  ;;  %v958_v55 = vld [vmem:[%s1464_s1 + $0x1b4] sm:$0xf0]  ;;  %v768_v58 = vor.u32 %v942_v53, %v767_v52  ;;  %v908_v60 = vld [vmem:[%s1464_s1 + $0x24] sm:$0xf0] }
   0xf   :  { %513 = vmatpush.bf16.msra.mxu3 %v848_v38  ;;  %v695_v61 = vld [vmem:[%s1464_s1 + $0xa0] sm:$0xf]  ;;  %v832_v62 = vor.u32 %v958_v55, %v831_v54  ;;  %v924_v63 = vld [vmem:[%s1464_s1 + $0xa4] sm:$0xf0]  ;;  %v632_v4 = vor.u32 %v908_v60, %v631_v59  ;;  %v623_v5 = vld [vmem:[%s1464_s1 + $0x10] sm:$0xf] }
  0x10   :  { %475 = vmatpush.bf16.msra.mxu0 %v648_v44  ;;  %v759_v0 = vld [vmem:[%s1464_s1 + $0x120] sm:$0xf]  ;;  %v940_v1 = vld [vmem:[%s1464_s1 + $0x124] sm:$0xf0]  ;;  %v696_v6 = vor.u32 %v924_v63, %v695_v61  ;;  %v906_v8 = vld [vmem:[%s1464_s1 + $0x14] sm:$0xf0] }
  0x11   :  { %488 = vmatpush.bf16.msra.mxu1 %v712_v45  ;;  %v823_v2 = vld [vmem:[%s1464_s1 + $0x1a0] sm:$0xf]  ;;  %v956_v3 = vld [vmem:[%s1464_s1 + $0x1a4] sm:$0xf0]  ;;  %v760_v7 = vor.u32 %v940_v1, %v759_v0  ;;  %v687_v9 = vld [vmem:[%s1464_s1 + $0x90] sm:$0xf]  ;;  %v624_v18 = vor.u32 %v906_v8, %v623_v5 }
  0x12   :  { %501 = vmatpush.bf16.msra.mxu2 %v776_v46  ;;  %v922_v10 = vld [vmem:[%s1464_s1 + $0x94] sm:$0xf0]  ;;  %v824_v11 = vor.u32 %v956_v3, %v823_v2  ;;  %v751_v12 = vld [vmem:[%s1464_s1 + $0x110] sm:$0xf]  ;;  %v615_v16 = vld [vmem:[%s1464_s1] sm:$0xf] }
  0x13   :  { %514 = vmatpush.bf16.msra.mxu3 %v840_v50  ;;  %v938_v13 = vld [vmem:[%s1464_s1 + $0x114] sm:$0xf0]  ;;  %v815_v14 = vld [vmem:[%s1464_s1 + $0x190] sm:$0xf]  ;;  %v904_v17 = vld [vmem:[%s1464_s1 + $0x4] sm:$0xf0]  ;;  %v688_v22 = vor.u32 %v922_v10, %v687_v9 }
  0x14   :  { %476 = vmatpush.bf16.msra.mxu0 %v640_v56  ;;  %v954_v15 = vld [vmem:[%s1464_s1 + $0x194] sm:$0xf0]  ;;  %v679_v19 = vld [vmem:[%s1464_s1 + $0x80] sm:$0xf]  ;;  %v920_v20 = vld [vmem:[%s1464_s1 + $0x84] sm:$0xf0]  ;;  %v752_v23 = vor.u32 %v938_v13, %v751_v12  ;;  %v616_v34 = vor.u32 %v904_v17, %v615_v16 }
  0x15   :  { %489 = vmatpush.bf16.msra.mxu1 %v704_v57  ;;  %v743_v21 = vld [vmem:[%s1464_s1 + $0x100] sm:$0xf]  ;;  %v936_v24 = vld [vmem:[%s1464_s1 + $0x104] sm:$0xf0]  ;;  %v816_v27 = vor.u32 %v954_v15, %v815_v14  ;;  %v895_v28 = vld [vmem:[%s1464_s1 + $0x230] sm:$0xf]  ;;  %v680_v37 = vor.u32 %v920_v20, %v679_v19 }
  0x16   :  { %502 = vmatpush.bf16.msra.mxu2 %v768_v58  ;;  %v807_v25 = vld [vmem:[%s1464_s1 + $0x180] sm:$0xf]  ;;  %v952_v26 = vld [vmem:[%s1464_s1 + $0x184] sm:$0xf0]  ;;  %v974_v29 = vld [vmem:[%s1464_s1 + $0x234] sm:$0xf0]  ;;  %v744_v38 = vor.u32 %v936_v24, %v743_v21 }
  0x17   :  { %515 = vmatpush.bf16.msra.mxu3 %v832_v62  ;;  %v917_v30 = vld [vmem:[%s1464_s1 + $0x74] sm:$0xf]  ;;  %v673_v31 = vld [vmem:[%s1464_s1 + $0x78] sm:$0xf0]  ;;  %v15_v33 = vld [vmem:[%s1465_s0] sm:$0xff]  ;;  %v808_v41 = vor.u32 %v952_v26, %v807_v25  ;;  %v896_v42 = vor.u32 %v974_v29, %v895_v28 }
  0x18   :  { %477 = vmatpush.bf16.msra.mxu0 %v632_v4  ;;  %v933_v32 = vld [vmem:[%s1464_s1 + $0xf4] sm:$0xf]  ;;  %v737_v35 = vld [vmem:[%s1464_s1 + $0xf8] sm:$0xf0]  ;;  %v16_v36 = vld [vmem:[%s1465_s0 + $0x8] sm:$0x3]  ;;  %v676_v44 = vor.u32 %v917_v30, %v673_v31 }
  0x19   :  { %490 = vmatpush.bf16.msra.mxu1 %v696_v6  ;;  %96 = vst [vmem:[#allocation1] ss:$4 sm:$0xff] %v15_v33  ;;  %v949_v39 = vld [vmem:[%s1464_s1 + $0x174] sm:$0xf]  ;;  %v801_v40 = vld [vmem:[%s1464_s1 + $0x178] sm:$0xf0]  ;;  %v740_v45 = vor.u32 %v933_v32, %v737_v35 }
  0x1a   :  { %503 = vmatpush.bf16.msra.mxu2 %v760_v7  ;;  %99 = vst [vmem:[#allocation1 + $0x20] ss:$4 sm:$0xff] %v16_v36  ;;  %v887_v43 = vld [vmem:[%s1464_s1 + $0x220] sm:$0xf]  ;;  %v972_v46 = vld [vmem:[%s1464_s1 + $0x224] sm:$0xf0]  ;;  %v804_v49 = vor.u32 %v949_v39, %v801_v40 }
  0x1b   :  { %516 = vmatpush.bf16.msra.mxu3 %v824_v11  ;;  %v915_v47 = vld [vmem:[%s1464_s1 + $0x64] sm:$0xf]  ;;  %v665_v48 = vld [vmem:[%s1464_s1 + $0x68] sm:$0xf0]  ;;  %v879_v54 = vld [vmem:[%s1464_s1 + $0x210] sm:$0xf]  ;;  %v888_v56 = vor.u32 %v972_v46, %v887_v43 }
  0x1c   :  { %478 = vmatpush.bf16.msra.mxu0 %v624_v18  ;;  %v931_v50 = vld [vmem:[%s1464_s1 + $0xe4] sm:$0xf]  ;;  %v729_v51 = vld [vmem:[%s1464_s1 + $0xe8] sm:$0xf0]  ;;  %v970_v55 = vld [vmem:[%s1464_s1 + $0x214] sm:$0xf0]  ;;  %v668_v61 = vor.u32 %v915_v47, %v665_v48 }
  0x1d   :  { %491 = vmatpush.bf16.msra.mxu1 %v688_v22  ;;  %v947_v52 = vld [vmem:[%s1464_s1 + $0x164] sm:$0xf]  ;;  %v793_v53 = vld [vmem:[%s1464_s1 + $0x168] sm:$0xf0]  ;;  %v913_v57 = vld [vmem:[%s1464_s1 + $0x54] sm:$0xf]  ;;  %v732_v62 = vor.u32 %v931_v50, %v729_v51  ;;  %v880_v6 = vor.u32 %v970_v55, %v879_v54 }
  0x1e   :  { %504 = vmatpush.bf16.msra.mxu2 %v752_v23  ;;  %v657_v58 = vld [vmem:[%s1464_s1 + $0x58] sm:$0xf0]  ;;  %v929_v59 = vld [vmem:[%s1464_s1 + $0xd4] sm:$0xf]  ;;  %v796_v1 = vor.u32 %v947_v52, %v793_v53  ;;  %v871_v7 = vld [vmem:[%s1464_s1 + $0x200] sm:$0xf] }
  0x1f   :  { %517 = vmatpush.bf16.msra.mxu3 %v816_v27  ;;  %v721_v60 = vld [vmem:[%s1464_s1 + $0xd8] sm:$0xf0]  ;;  %v945_v4 = vld [vmem:[%s1464_s1 + $0x154] sm:$0xf]  ;;  %v660_v8 = vor.u32 %v913_v57, %v657_v58  ;;  %v968_v10 = vld [vmem:[%s1464_s1 + $0x204] sm:$0xf0] }
  0x20   :  { %479 = vmatpush.bf16.msra.mxu0 %v616_v34  ;;  %v1262_v63 = vld.sshfl [vmem:[#allocation1] sm:$0xff pattern:$0x73625140]  ;;  %v1264_v0 = vld.sshfl [vmem:[#allocation1 + $0x8] sm:$0xff pattern:$0x73625140]  ;;  %v724_v9 = vor.u32 %v929_v59, %v721_v60  ;;  %v872_v20 = vor.u32 %v968_v10, %v871_v7 }
  0x21   :  { %492 = vmatpush.bf16.msra.mxu1 %v680_v37  ;;  %v1267_v2 = vld.sshfl [vmem:[#allocation1 + $0x10] sm:$0xff pattern:$0x73625140]  ;;  %v1269_v3 = vld.sshfl [vmem:[#allocation1 + $0x18] sm:$0xff pattern:$0x73625140] }
  0x22   :  { %505 = vmatpush.bf16.msra.mxu2 %v744_v38  ;;  %v785_v5 = vld [vmem:[%s1464_s1 + $0x158] sm:$0xf0]  ;;  %v911_v11 = vld [vmem:[%s1464_s1 + $0x44] sm:$0xf]  ;;  %v649_v12 = vld [vmem:[%s1464_s1 + $0x48] sm:$0xf0] }
  0x23   :  { %518 = vmatpush.bf16.msra.mxu3 %v808_v41  ;;  %480 = vmatmul.bf16.vlgmr.msra.gmra.mxu0 %v1262_v63  ;;  %v788_v13 = vor.u32 %v945_v4, %v785_v5  ;;  %v927_v14 = vld [vmem:[%s1464_s1 + $0xc4] sm:$0xf]  ;;  %v713_v15 = vld [vmem:[%s1464_s1 + $0xc8] sm:$0xf0]  ;;  %v965_v18 = vld [vmem:[%s1464_s1 + $0x1f4] sm:$0xf]  ;;  %v652_v21 = vor.u32 %v911_v11, %v649_v12 }
  0x24   :  { %528 = vmatpush.bf16.msrb.mxu0 %v896_v42  ;;  %493 = vmatmul.bf16.vlgmr.msra.gmra.mxu1 %v1264_v0  ;;  %v943_v16 = vld [vmem:[%s1464_s1 + $0x144] sm:$0xf]  ;;  %v777_v17 = vld [vmem:[%s1464_s1 + $0x148] sm:$0xf0]  ;;  %v865_v19 = vld [vmem:[%s1464_s1 + $0x1f8] sm:$0xf0]  ;;  %v716_v22 = vor.u32 %v927_v14, %v713_v15 }
  0x25   :  { %537 = vmatpush.bf16.msrb.mxu1 %v676_v44  ;;  %506 = vmatmul.bf16.vlgmr.msra.gmra.mxu2 %v1267_v2  ;;  %v909_v23 = vld [vmem:[%s1464_s1 + $0x34] sm:$0xf]  ;;  %v641_v24 = vld [vmem:[%s1464_s1 + $0x38] sm:$0xf0]  ;;  %v89_v25 = vld [vmem:[%s1466_s2] sm:$0xf]  ;;  %v780_v26 = vor.u32 %v943_v16, %v777_v17  ;;  %v868_v27 = vor.u32 %v965_v18, %v865_v19 }
  0x26   :  { %550 = vmatpush.bf16.msrb.mxu2 %v740_v45  ;;  %519 = vmatmul.bf16.vlgmr.msra.gmra.mxu3 %v1269_v3  ;;  %v925_v28 = vld [vmem:[%s1464_s1 + $0xb4] sm:$0xf]  ;;  %v705_v29 = vld [vmem:[%s1464_s1 + $0xb8] sm:$0xf0]  ;;  %v977_v31 = vmov 0   ;;  %v644_v35 = vor.u32 %v909_v23, %v641_v24 }
  0x27   :  { %563 = vmatpush.bf16.msrb.mxu3 %v804_v49  ;;  %v941_v30 = vld [vmem:[%s1464_s1 + $0x134] sm:$0xf]  ;;  %976 = vset.pattern.permute.xlu0 %v977_v31  ;;  %v769_v32 = vld [vmem:[%s1464_s1 + $0x138] sm:$0xf0]  ;;  %v963_v33 = vld [vmem:[%s1464_s1 + $0x1e4] sm:$0xf]  ;;  %v708_v36 = vor.u32 %v925_v28, %v705_v29 }
  0x28   :  { %529 = vmatpush.bf16.msrb.mxu0 %v888_v56  ;;  %v857_v34 = vld [vmem:[%s1464_s1 + $0x1e8] sm:$0xf0]  ;;  %92 = vperm.xlu0 %976, %v89_v25   ;;  %v907_v37 = vld [vmem:[%s1464_s1 + $0x24] sm:$0xf]  ;;  %v772_v39 = vor.u32 %v941_v30, %v769_v32  ;;  %v961_v45 = vld [vmem:[%s1464_s1 + $0x1d4] sm:$0xf] }
  0x29   :  { %538 = vmatpush.bf16.msrb.mxu1 %v668_v61  ;;  %v633_v38 = vld [vmem:[%s1464_s1 + $0x28] sm:$0xf0]  ;;  %v860_v40 = vor.u32 %v963_v33, %v857_v34  ;;  %v923_v41 = vld [vmem:[%s1464_s1 + $0xa4] sm:$0xf]  ;;  %v849_v46 = vld [vmem:[%s1464_s1 + $0x1d8] sm:$0xf0] }
  0x2a   :  { %551 = vmatpush.bf16.msrb.mxu2 %v732_v62  ;;  %v697_v42 = vld [vmem:[%s1464_s1 + $0xa8] sm:$0xf0]  ;;  %v939_v43 = vld [vmem:[%s1464_s1 + $0x124] sm:$0xf]  ;;  %v636_v48 = vor.u32 %v907_v37, %v633_v38  ;;  %v905_v50 = vld [vmem:[%s1464_s1 + $0x14] sm:$0xf]  ;;  %v852_v53 = vor.u32 %v961_v45, %v849_v46 }
  0x2b   :  { %564 = vmatpush.bf16.msrb.mxu3 %v796_v1  ;;  %v761_v44 = vld [vmem:[%s1464_s1 + $0x128] sm:$0xf0]  ;;  %v1361_v47 = vld.sshfl [vmem:[#allocation1 + $0x20] sm:$0xff pattern:$0x73625140]  ;;  %v700_v49 = vor.u32 %v923_v41, %v697_v42 }
  0x2c   :  { %530 = vmatpush.bf16.msrb.mxu0 %v880_v6  ;;  %v625_v51 = vld [vmem:[%s1464_s1 + $0x18] sm:$0xf0]  ;;  %v764_v52 = vor.u32 %v939_v43, %v761_v44  ;;  %v921_v54 = vld [vmem:[%s1464_s1 + $0x94] sm:$0xf]  ;;  %v959_v58 = vld [vmem:[%s1464_s1 + $0x1c4] sm:$0xf] }
  0x2d   :  { %539 = vmatpush.bf16.msrb.mxu1 %v660_v8  ;;  %v689_v55 = vld [vmem:[%s1464_s1 + $0x98] sm:$0xf0]  ;;  %v937_v56 = vld [vmem:[%s1464_s1 + $0x114] sm:$0xf]  ;;  %v841_v59 = vld [vmem:[%s1464_s1 + $0x1c8] sm:$0xf0]  ;;  %v628_v60 = vor.u32 %v905_v50, %v625_v51 }
  0x2e   :  { %552 = vmatpush.bf16.msrb.mxu2 %v724_v9  ;;  %v753_v57 = vld [vmem:[%s1464_s1 + $0x118] sm:$0xf0]  ;;  %v692_v61 = vor.u32 %v921_v54, %v689_v55  ;;  %v903_v62 = vld [vmem:[%s1464_s1 + $0x4] sm:$0xf]  ;;  %v617_v1 = vld [vmem:[%s1464_s1 + $0x8] sm:$0xf0]  ;;  %v844_v5 = vor.u32 %v959_v58, %v841_v59 }
  0x2f   :  { %565 = vmatpush.bf16.msrb.mxu3 %v788_v13  ;;  %v756_v4 = vor.u32 %v937_v56, %v753_v57  ;;  %v919_v6 = vld [vmem:[%s1464_s1 + $0x84] sm:$0xf]  ;;  %v681_v7 = vld [vmem:[%s1464_s1 + $0x88] sm:$0xf0]  ;;  %v957_v10 = vld [vmem:[%s1464_s1 + $0x1b4] sm:$0xf]  ;;  %v620_v14 = vor.u32 %v903_v62, %v617_v1 }
  0x30   :  { %531 = vmatpush.bf16.msrb.mxu0 %v872_v20  ;;  %v935_v8 = vld [vmem:[%s1464_s1 + $0x104] sm:$0xf]  ;;  %v745_v9 = vld [vmem:[%s1464_s1 + $0x108] sm:$0xf0]  ;;  %v833_v11 = vld [vmem:[%s1464_s1 + $0x1b8] sm:$0xf0]  ;;  %v684_v15 = vor.u32 %v919_v6, %v681_v7 }
  0x31   :  { %540 = vmatpush.bf16.msrb.mxu1 %v652_v21  ;;  %v973_v12 = vld [vmem:[%s1464_s1 + $0x234] sm:$0xf]  ;;  %v897_v13 = vld [vmem:[%s1464_s1 + $0x238] sm:$0xf0]  ;;  %v748_v16 = vor.u32 %v935_v8, %v745_v9  ;;  %v836_v17 = vor.u32 %v957_v10, %v833_v11  ;;  %v955_v19 = vld [vmem:[%s1464_s1 + $0x1a4] sm:$0xf] }
  0x32   :  { %553 = vmatpush.bf16.msrb.mxu2 %v716_v22  ;;  %v900_v18 = vor.u32 %v973_v12, %v897_v13  ;;  %v825_v20 = vld [vmem:[%s1464_s1 + $0x1a8] sm:$0xf0]  ;;  %v971_v21 = vld [vmem:[%s1464_s1 + $0x224] sm:$0xf]  ;;  %v953_v25 = vld [vmem:[%s1464_s1 + $0x194] sm:$0xf] }
  0x33   :  { %566 = vmatpush.bf16.msrb.mxu3 %v780_v26  ;;  %901 = vmatmul.msk.bf16.vlgmr.msrb.gmra.mxu0 %vm469_vm0, %v1361_v47  ;;  %v889_v22 = vld [vmem:[%s1464_s1 + $0x228] sm:$0xf0]  ;;  %v828_v23 = vor.u32 %v955_v19, %v825_v20  ;;  %v817_v26 = vld [vmem:[%s1464_s1 + $0x198] sm:$0xf0]  ;;  %v967_v31 = vld [vmem:[%s1464_s1 + $0x204] sm:$0xf] }
  0x34   :  { %576 = vmatpush.bf16.msra.mxu0 %v868_v27  ;;  %v892_v24 = vor.u32 %v971_v21, %v889_v22  ;;  %v969_v27 = vld [vmem:[%s1464_s1 + $0x214] sm:$0xf]  ;;  %v881_v28 = vld [vmem:[%s1464_s1 + $0x218] sm:$0xf0]  ;;  %v820_v29 = vor.u32 %v953_v25, %v817_v26 }
  0x35   :  { %541 = vmatpush.bf16.msrb.mxu1 %v644_v35  ;;  %v884_v30 = vor.u32 %v969_v27, %v881_v28 }
  0x36   :  { %554 = vmatpush.bf16.msrb.mxu2 %v708_v36 }
  0x37   :  { %567 = vmatpush.bf16.msrb.mxu3 %v772_v39 }
  0x38   :  { %577 = vmatpush.bf16.msra.mxu0 %v860_v40 }
  0x39   :  { %542 = vmatpush.bf16.msrb.mxu1 %v636_v48 }
  0x3a   :  { %555 = vmatpush.bf16.msrb.mxu2 %v700_v49 }
  0x3b   :  { %568 = vmatpush.bf16.msrb.mxu3 %v764_v52 }
  0x3c   :  { %578 = vmatpush.bf16.msra.mxu0 %v852_v53 }
  0x3d   :  { %543 = vmatpush.bf16.msrb.mxu1 %v628_v60 }
  0x3e   :  { %556 = vmatpush.bf16.msrb.mxu2 %v692_v61 }
  0x3f   :  { %569 = vmatpush.bf16.msrb.mxu3 %v756_v4 }
  0x40   :  { %579 = vmatpush.bf16.msra.mxu0 %v844_v5 }
  0x41   :  { %544 = vmatpush.bf16.msrb.mxu1 %v620_v14 }
  0x42   :  { %557 = vmatpush.bf16.msrb.mxu2 %v684_v15 }
  0x43   :  { %570 = vmatpush.bf16.msrb.mxu3 %v748_v16 }
  0x44   :  { %580 = vmatpush.bf16.msra.mxu0 %v836_v17  ;;  %545 = vmatmul.bf16.vlgmr.msrb.gmra.mxu1 %v1262_v63  ;;  %v951_v63 = vld [vmem:[%s1464_s1 + $0x184] sm:$0xf] }
  0x45   :  { %593 = vmatpush.bf16.msra.mxu1 %v900_v18  ;;  %558 = vmatmul.bf16.vlgmr.msrb.gmra.mxu2 %v1264_v0  ;;  %v809_v0 = vld [vmem:[%s1464_s1 + $0x188] sm:$0xf0] }
  0x46   :  { %571 = vmatmul.bf16.vlgmr.msrb.gmra.mxu3 %v1267_v2  ;;  %v873_v2 = vld [vmem:[%s1464_s1 + $0x208] sm:$0xf0]  ;;  %v812_v32 = vor.u32 %v951_v63, %v809_v0 }
  0x47   :  { %v876_v33 = vor.u32 %v967_v31, %v873_v2 }
  0x48   :  { %581 = vmatpush.bf16.msra.mxu0 %v828_v23 }
  0x49   :  { %594 = vmatpush.bf16.msra.mxu1 %v892_v24 }
  0x4c   :  { %582 = vmatpush.bf16.msra.mxu0 %v820_v29 }
  0x4d   :  { %595 = vmatpush.bf16.msra.mxu1 %v884_v30 }
  0x50   :  { %583 = vmatpush.bf16.msra.mxu0 %v812_v32 }
  0x51   :  { %596 = vmatpush.bf16.msra.mxu1 %v876_v33 }
  0x53   :  { %584 = vmatmul.bf16.vlgmr.msra.gmra.mxu0 %v1269_v3 }
  0x54   :  { %902 = vmatmul.msk.bf16.vlgmr.msra.gmra.mxu1 %vm469_vm0, %v1361_v47 }
  0x9a   :  { %v93_v44 = vpop.permute.xlu0 %92 }
  0xa0   :  { %v481_v34 = vpop.f32.mrf.mxu0 }
  0xa1   :  { %v494_v35 = vpop.f32.mrf.mxu1  ;;  %v482_v46 = vadd.f32 %v481_v34, %v93_v44 }
  0xa3   :  { %v495_v50 = vadd.f32 %v494_v35, %v482_v46 }
  0xa8   :  { %v507_v36 = vpop.f32.mrf.mxu2  ;;  %v483_v37 = vpop.f32.mrf.mxu0 }
  0xa9   :  { %v520_v38 = vpop.f32.mrf.mxu3  ;;  %v496_v39 = vpop.f32.mrf.mxu1  ;;  %v508_v47 = vadd.f32 %v507_v36, %v495_v50 }
  0xab   :  { %v521_v57 = vadd.f32 %v520_v38, %v508_v47 }
  0xb0   :  { %v509_v40 = vpop.f32.mrf.mxu2  ;;  %v533_v42 = vpop.f32.mrf.mxu0 }
  0xb1   :  { %v522_v41 = vpop.f32.mrf.mxu3  ;;  %v534_v61 = vadd.f32 %v533_v42, %v521_v57 }
  0xb8   :  { %v535_v43 = vpop.f32.mrf.mxu0 }
  0xc1   :  { %v546_v45 = vpop.f32.mrf.mxu1 }
  0xc2   :  { %v547_v48 = vadd.f32 %v546_v45, %v93_v44 }
  0xc8   :  { %v559_v49 = vpop.f32.mrf.mxu2 }
  0xc9   :  { %v572_v3 = vpop.f32.mrf.mxu3  ;;  %v560_v51 = vadd.f32 %v559_v49, %v547_v48  ;;  %v548_v52 = vpop.f32.mrf.mxu1 }
  0xcb   :  { %v573_v53 = vadd.f32 %v572_v3, %v560_v51 }
  0xd0   :  { %v585_v54 = vpop.f32.mrf.mxu0  ;;  %v561_v56 = vpop.f32.mrf.mxu2 }
  0xd1   :  { %v586_v55 = vadd.f32 %v585_v54, %v573_v53  ;;  %v574_v58 = vpop.f32.mrf.mxu3  ;;  %v598_v59 = vpop.f32.mrf.mxu1 }
  0xd3   :  { %v599_v60 = vadd.f32 %v598_v59, %v586_v55 }
  0xd5   :  { %v604_v62 = vrot.slane %v599_v60, 4 }
  0xd7   :  { %v606_v1 = vsel %vm605_vm1, %v534_v61, %v604_v62 }
  0xd8   :  { %v587_v4 = vpop.f32.mrf.mxu0  ;;  %608 = vst [vmem:[%s1467_s3] sm:$0xff] %v606_v1 }
  0xd9   :  { %v600_v5 = vpop.f32.mrf.mxu1 }

// kernel: down_pixel_3d_layer_axis.8
= control target key start
LH: loop header
LB: loop body
LE: loop exit
PB: predicated region body
PF: predicated region fallthrough
CT: control target
= control target key end

     0   :  { %v78_v1 = vmov 128.0   ;;  %v79_v3 = vmov 0   ;;  %s112_s0 = inlined_call_operand.vmem [shape: f32[8,128], index: 0, kind: input, shape index: {}]   ;;  %s113_s1 = inlined_call_operand.vmem [shape: f32[8,1], index: 1, kind: input, shape index: {}]   ;;  %s114_s2 = inlined_call_operand.vmem [shape: f32[8,1], index: 2, kind: input, shape index: {}]   ;;  %s115_s3 = inlined_call_operand.vmem [shape: f32[8,128], index: 3, kind: output, shape index: {}]  }
   0x1   :  { %v14_v0 = vld [vmem:[%s112_s0] sm:$0xff]  ;;  %72 = vrcp.f32 %v78_v1  ;;  %70 = vset.pattern.permute.xlu1 %v79_v3  ;;  %71 = vset.pattern.permute.xlu0 %v79_v3 }
   0x2   :  { %15 = vadd.xlane.f32.xlu0 %v14_v0  ;;  %v42_v2 = vld [vmem:[%s113_s1] sm:$0xff] }
   0x3   :  { %46 = vperm.xlu1 %70, %v42_v2   ;;  %v43_v6 = vld [vmem:[%s114_s2] sm:$0xff] }
   0x7   :  { %v73_v4 = vpop.eup %72 }
   0x8   :  { %v18_v5 = vmul.f32 128.0, %v73_v4  ;;  %vm22_vm0 = vweird.f32 %v73_v4 }
   0xa   :  { %v19_v7 = vsub.f32 1.0, %v18_v5 }
   0xb   :  { %52 = vperm.xlu1 %70, %v43_v6  }
   0xc   :  { %v20_v8 = vmul.f32 %v73_v4, %v19_v7 }
   0xe   :  { %v21_v9 = vadd.f32 %v73_v4, %v20_v8 }
  0x10   :  { %v23_v10 = vsel %vm22_vm0, %v73_v4, %v21_v9 }
  0x75   :  { %v16_v11 = vpop.xlane.xlu0 %15  ;;  %v47_v22 = vpop.permute.xlu1 %46 }
  0x76   :  { %v24_v12 = vmul.f32 %v23_v10, %v16_v11 }
  0x78   :  { %v25_v13 = vsub.f32 %v14_v0, %v24_v12 }
  0x7a   :  { %v26_v14 = vmul.f32 %v25_v13, %v25_v13 }
  0x7c   :  { %27 = vadd.xlane.f32.xlu0 %v26_v14 }
  0x7d   :  { %v53_v28 = vpop.permute.xlu1 %52 }
  0xef   :  { %v28_v15 = vpop.xlane.xlu0 %27 }
  0xf0   :  { %v29_v16 = vmul.f32 %v28_v15, %v23_v10 }
  0xf2   :  { %v30_v17 = vadd.f32 1e-05, %v29_v16 }
  0xf4   :  { %74 = vrsqrt.f32 %v30_v17  ;;  %vm37_vm2 = vweird.f32 %v30_v17 }
  0xfa   :  { %v75_v18 = vpop.eup %74 }
  0xfb   :  { %v32_v19 = vmul.f32 %v75_v18, %v30_v17  ;;  %vm38_vm1 = vweird.f32 %v75_v18 }
  0xfc   :  { %vm39_vm3 = vmor %vm37_vm2, %vm38_vm1 }
  0xfd   :  { %v33_v20 = vmul.f32 %v75_v18, %v32_v19 }
  0xff   :  { %v34_v21 = vmul.f32 0.5, %v33_v20 }
 0x101   :  { %v35_v23 = vsub.f32 1.5, %v34_v21 }
 0x103   :  { %v36_v24 = vmul.f32 %v75_v18, %v35_v23 }
 0x105   :  { %v40_v25 = vsel %vm39_vm3, %v75_v18, %v36_v24 }
 0x106   :  { %v41_v26 = vmul.f32 %v40_v25, %v25_v13 }
 0x108   :  { %v49_v27 = vmul.f32 %v47_v22, %v41_v26 }
 0x10a   :  { %v55_v29 = vadd.f32 %v53_v28, %v49_v27 }
 0x10c   :  { %v57_v30 = vmin.f32 %v55_v29, 0.0  ;;  %vm56_vm4 = vcmp.gt.f32.partialorder %v55_v29, 0.0 }
 0x10e   :  { %v58_v31 = vmul.f32 1.442695, %v57_v30 }
 0x110   :  { %76 = vpow2.f32 %v58_v31 }
 0x116   :  { %v77_v32 = vpop.eup %76 }
 0x117   :  { %v67_v33 = vadd.f32 -1.0, %v77_v32 }
 0x119   :  { %v61_v34 = vsel %vm56_vm4, %v55_v29, %v67_v33 }
 0x11a   :  { %62 = vst [vmem:[%s115_s3] sm:$0xff] %v61_v34 }

// kernel: down_pixel_3d_layer_axis.9
= control target key start
LH: loop header
LB: loop body
LE: loop exit
PB: predicated region body
PF: predicated region fallthrough
CT: control target
= control target key end

     0   :  { %s514_s12 = smov 0   ;;  %s516_s13 = smov 0   ;;  %s572_s0 = inlined_call_operand.vmem [shape: bf16[8,32], index: 0, kind: input, shape index: {}]   ;;  %s573_s1 = inlined_call_operand.vmem [shape: bf16[32,1024], index: 1, kind: input, shape index: {}]   ;;  %s574_s2 = inlined_call_operand.vmem [shape: f32[8,1], index: 2, kind: input, shape index: {}]   ;;  %s575_s3 = inlined_call_operand.vmem [shape: f32[8,1024], index: 3, kind: output, shape index: {}]  }
   0x1   :  { %s518_s14 = smov 0  }
   0x2 LB: > { %s385_s15 = sadd.s32 4294967295, %s491_s14   ;;  %s531_s16 = sadd.s32 1, %s491_s14   ;;  %s491_s14 = sphi %s518_s14, %s578_s14   ;;  %s487_s13 = sphi %s516_s13, %s577_s13   ;;  %s483_s12 = sphi %s514_s12, %s576_s12  }
   0x3   : > { %s38_s17 = ssub.s32 %s491_s14, %s531_s16  ;;  %s41_s18 = sadd.s32 1, %s487_s13 }
   0x4   : > { %p39_p0 = scmp.eq.s32.totalorder %s38_s17, 0  ;;  %p48_p1 = scmp.ne.s32.totalorder %s487_s13, %s483_s12 }
   0x5   : > { %p49_p2 = scmp.eq.s32.totalorder %s491_s14, 0  ;;  %p388_p4 = scmp.ge.s32.totalorder %s491_s14, 2 }
   0x6   : > { %s540_s19 = scalar_select %p39_p0, %s487_s13, %s41_s18  }
   0x7   : > { %p50_p3 = por %p49_p2, %p48_p1  ;;  %127 = sbr.rel (%p388_p4) target bundleno = 24 (0x18), region = 24 }
   0xc   : > { %130 = sbr.rel (!%p50_p3) target bundleno = 24 (0x18), region = 28  ;;  %s132_s20 = sand.u32 (%p50_p3), 1, %s487_s13  }
   0xd   : > { %s434_s21 = sshll.u32 (%p50_p3), %s491_s14, 4  ;;  %s389_s22 = sshll.u32 (%p50_p3), %s132_s20, 6 }
   0xe   : > { %s137_s25 = scalar_lea.vmem (%p50_p3), %s573_s1, %s434_s21  ;;  %s134_s26 = scalar_lea.vmem (%p50_p3), [#allocation2], %s389_s22 }
   0xf   : > { %v150_v0 = vld [vmem:[%s137_s25] sm:$0xff] (%p50_p3)  ;;  %v152_v1 = vld [vmem:[%s137_s25 + $0x8] sm:$0xff] (%p50_p3) }
  0x10   : > { %v154_v2 = vld [vmem:[%s137_s25 + $0x20] sm:$0xff] (%p50_p3)  ;;  %151 = vst [vmem:[%s134_s26] sm:$0xff] (%p50_p3), %v150_v0  ;;  %v156_v3 = vld [vmem:[%s137_s25 + $0x28] sm:$0xff] (%p50_p3) }
  0x11   : > { %153 = vst [vmem:[%s134_s26 + $0x8] sm:$0xff] %v152_v1  ;;  %v158_v4 = vld [vmem:[%s137_s25 + $0x40] sm:$0xff]  ;;  %v160_v5 = vld [vmem:[%s137_s25 + $0x48] sm:$0xff] }
  0x12   : > { %155 = vst [vmem:[%s134_s26 + $0x10] sm:$0xff] %v154_v2  ;;  %v162_v6 = vld [vmem:[%s137_s25 + $0x60] sm:$0xff]  ;;  %v164_v7 = vld [vmem:[%s137_s25 + $0x68] sm:$0xff] }
  0x13   : > { %157 = vst [vmem:[%s134_s26 + $0x18] sm:$0xff] %v156_v3 }
  0x14   : > { %159 = vst [vmem:[%s134_s26 + $0x20] sm:$0xff] %v158_v4 }
  0x15   : > { %161 = vst [vmem:[%s134_s26 + $0x28] sm:$0xff] %v160_v5 }
  0x16   : > { %163 = vst [vmem:[%s134_s26 + $0x30] sm:$0xff] %v162_v6 }
  0x17   : > { %165 = vst [vmem:[%s134_s26 + $0x38] sm:$0xff] %v164_v7 }
  0x18 PF: > { %p392_p5 = scmp.ge.s32.totalorder %s491_s14, 1  ;;  %p170_p6 = scmp.lt.s32.totalorder %s491_s14, 3 }
  0x1a   : > { %p171_p7 = pnand %p392_p5, %p170_p6 }
  0x1b   : > { %s177_s27 = sand.u32 (!%p171_p7), 1, %s483_s12   ;;  %s394_s7 = sshll.u32 (!%p171_p7), %s385_s15, 2 }
  0x1c   : > { %174 = sbr.rel (%p171_p7) target bundleno = 185 (0xb9), region = 51  ;;  %s393_s30 = sshll.u32 (!%p171_p7), %s177_s27, 6 }
  0x1d   : > { %s179_s4 = scalar_lea.vmem (!%p171_p7), [#allocation2], %s393_s30  ;;  %p202_p8 = scmp.lt.s32.totalorder (!%p171_p7), %s394_s7, 7 }
  0x21   : > { %v217_v8 = vld [vmem:[%s574_s2] sm:$0xff]  ;;  %v493_v9 = vmov 0   ;;  %v441_v11 = vld [vmem:[%s179_s4 + $0x2c] sm:$0xf0]  ;;  %v416_v14 = vld [vmem:[%s179_s4 + $0x30] sm:$0xf0] }
  0x22   : > { %468 = vset.pattern.permute.xlu0 %v493_v9  ;;  %v414_v10 = vld [vmem:[%s179_s4 + $0x20] sm:$0xf]  ;;  %v439_v12 = vld [vmem:[%s179_s4 + $0x24] sm:$0xf]  ;;  %v422_v15 = vld [vmem:[%s179_s4 + $0x28] sm:$0xf] }
  0x23   : > { %220 = vperm.xlu0 %468, %v217_v8   ;;  %v415_v13 = vor.u32 %v441_v11, %v414_v10  ;;  %v442_v16 = vld [vmem:[%s179_s4 + $0x34] sm:$0xf0]  ;;  %v419_v17 = vor.u32 %v439_v12, %v416_v14  ;;  %v440_v19 = vld [vmem:[%s179_s4 + $0x2c] sm:$0xf]  ;;  %v424_v20 = vld [vmem:[%s179_s4 + $0x38] sm:$0xf0] }
  0x24   : > { %v423_v18 = vor.u32 %v442_v16, %v422_v15  ;;  %v398_v21 = vld [vmem:[%s179_s4] sm:$0xf]  ;;  %v427_v22 = vor.u32 %v440_v19, %v424_v20  ;;  %v437_v23 = vld [vmem:[%s179_s4 + $0xc] sm:$0xf0]  ;;  %v435_v24 = vld [vmem:[%s179_s4 + $0x4] sm:$0xf] }
  0x25   : > { %273 = vmatpush.bf16.msra.mxu0 %v415_v13  ;;  %v400_v25 = vld [vmem:[%s179_s4 + $0x10] sm:$0xf0]  ;;  %286 = vmatpush.bf16.msra.mxu1 %v419_v17  ;;  %v399_v26 = vor.u32 %v437_v23, %v398_v21  ;;  %v406_v28 = vld [vmem:[%s179_s4 + $0x8] sm:$0xf]  ;;  %v438_v29 = vld [vmem:[%s179_s4 + $0x14] sm:$0xf0] }
  0x26   : > { %299 = vmatpush.bf16.msra.mxu2 %v423_v18  ;;  %v403_v27 = vor.u32 %v435_v24, %v400_v25  ;;  %v436_v30 = vld [vmem:[%s179_s4 + $0xc] sm:$0xf]  ;;  %312 = vmatpush.bf16.msra.mxu3 %v427_v22  ;;  %v407_v31 = vor.u32 %v438_v29, %v406_v28  ;;  %v408_v32 = vld [vmem:[%s179_s4 + $0x18] sm:$0xf0]  ;;  %v208_v34 = vld [vmem:[%s572_s0] sm:$0xf] }
  0x27   : > { %v411_v33 = vor.u32 %v436_v30, %v408_v32  ;;  %vm263_vm0 = vcmask 261120   ;;  %s580_s7 = smov (!%p202_p8, %s394_s7), 7 }
  0x28   : > { %s395_s8 = sshll.u32 %s580_s7, 3 }
  0x29   : > { %274 = vmatpush.bf16.msra.mxu0 %v399_v26  ;;  %287 = vmatpush.bf16.msra.mxu1 %v403_v27  ;;  %s205_s11 = scalar_lea.vmem %s575_s3, %s395_s8 }
  0x2a   : > { %300 = vmatpush.bf16.msra.mxu2 %v407_v31  ;;  %313 = vmatpush.bf16.msra.mxu3 %v411_v33 }
  0x2c   : > { %428 = vmatmul.msk.bf16.vlgmr.msra.gmra.mxu0 %vm263_vm0, %v208_v34  ;;  %429 = vmatmul.msk.bf16.vlgmr.msra.gmra.mxu1 %vm263_vm0, %v208_v34 }
  0x2d   : > { %430 = vmatmul.msk.bf16.vlgmr.msra.gmra.mxu2 %vm263_vm0, %v208_v34  ;;  %431 = vmatmul.msk.bf16.vlgmr.msra.gmra.mxu3 %vm263_vm0, %v208_v34 }
  0x95   : > { %v221_v35 = vpop.permute.xlu0 %220 }
  0xa9   : > { %v276_v36 = vpop.f32.mrf.mxu0  ;;  %v289_v37 = vpop.f32.mrf.mxu1 }
  0xaa   : > { %v277_v38 = vadd.f32 %v276_v36, %v221_v35  ;;  %v290_v39 = vadd.f32 %v289_v37, %v221_v35 }
  0xac   : > { %319 = vst [vmem:[%s205_s11] sm:$0xff] %v277_v38 }
  0xad   : > { %320 = vst [vmem:[%s205_s11 + $0x8] sm:$0xff] %v290_v39 }
  0xb0   : > { %v302_v40 = vpop.f32.mrf.mxu2  ;;  %v315_v42 = vpop.f32.mrf.mxu3 }
  0xb1   : > { %v303_v41 = vadd.f32 %v302_v40, %v221_v35  ;;  %v278_v43 = vpop.f32.mrf.mxu0  ;;  %v316_v44 = vadd.f32 %v315_v42, %v221_v35  ;;  %v291_v45 = vpop.f32.mrf.mxu1 }
  0xb3   : > { %321 = vst [vmem:[%s205_s11 + $0x10] sm:$0xff] %v303_v41 }
  0xb4   : > { %322 = vst [vmem:[%s205_s11 + $0x18] sm:$0xff] %v316_v44 }
  0xb8   : > { %v304_v46 = vpop.f32.mrf.mxu2  ;;  %v317_v47 = vpop.f32.mrf.mxu3 }
  0xb9 PF: > { %p10_p9 = scmp.ge.s32.totalorder %s531_s16, 4   ;;  %s576_s12 = smov %s487_s13 }
  0xba   : > { %s577_s13 = smov %s540_s19  ;;  %s578_s14 = smov %s531_s16 }
  0xbb   :  { %12 = sbr.rel (!%p10_p9) target bundleno = 2 (0x2), region = 90 }

// kernel: down_pixel_3d_layer_axis.10
= control target key start
LH: loop header
LB: loop body
LE: loop exit
PB: predicated region body
PF: predicated region fallthrough
CT: control target
= control target key end

     0   :  { %v581_v12 = vmov 0   ;;  %vm325_vm0 = vcmask 523264   ;;  %s722_s1 = inlined_call_operand.vmem [shape: bf16[576,128], index: 1, kind: input, shape index: {}]   ;;  %s723_s0 = inlined_call_operand.vmem [shape: bf16[4,576], index: 0, kind: input, shape index: {}]   ;;  %s724_s2 = inlined_call_operand.vmem [shape: f32[4,1], index: 2, kind: input, shape index: {}]   ;;  %s725_s3 = inlined_call_operand.vmem [shape: f32[4,128], index: 3, kind: output, shape index: {}]  }
   0x1   :  { %v550_v0 = vld [vmem:[%s722_s1 + $0x38] sm:$0xff]  ;;  %v549_v4 = vld [vmem:[%s722_s1 + $0x30] sm:$0xff]  ;;  %v548_v8 = vld [vmem:[%s722_s1 + $0x28] sm:$0xff]  ;;  %580 = vset.pattern.permute.xlu0 %v581_v12 }
   0x2   :  { %v566_v1 = vld [vmem:[%s722_s1 + $0xb8] sm:$0xff]  ;;  %328 = vmatpush.bf16.msra.mxu0 %v550_v0  ;;  %v565_v5 = vld [vmem:[%s722_s1 + $0xb0] sm:$0xff]  ;;  %v564_v9 = vld [vmem:[%s722_s1 + $0xa8] sm:$0xff] }
   0x3   :  { %v558_v2 = vld [vmem:[%s722_s1 + $0x78] sm:$0xff]  ;;  %354 = vmatpush.bf16.msra.mxu2 %v566_v1  ;;  %v557_v6 = vld [vmem:[%s722_s1 + $0x70] sm:$0xff]  ;;  %v556_v10 = vld [vmem:[%s722_s1 + $0x68] sm:$0xff] }
   0x4   :  { %v574_v3 = vld [vmem:[%s722_s1 + $0xf8] sm:$0xff]  ;;  %341 = vmatpush.bf16.msra.mxu1 %v558_v2  ;;  %v573_v7 = vld [vmem:[%s722_s1 + $0xf0] sm:$0xff]  ;;  %v572_v11 = vld [vmem:[%s722_s1 + $0xe8] sm:$0xff] }
   0x5   :  { %367 = vmatpush.bf16.msra.mxu3 %v574_v3  ;;  %v547_v13 = vld [vmem:[%s722_s1 + $0x20] sm:$0xff]  ;;  %v16_v18 = vld [vmem:[%s723_s0 + $0x8] sm:$0x3]  ;;  %v546_v20 = vld [vmem:[%s722_s1 + $0x18] sm:$0xff] }
   0x6   :  { %329 = vmatpush.bf16.msra.mxu0 %v549_v4  ;;  %v563_v14 = vld [vmem:[%s722_s1 + $0xa0] sm:$0xff]  ;;  %99 = vst [vmem:[#allocation1 + $0x20] ss:$4 sm:$0xff] %v16_v18  ;;  %v562_v21 = vld [vmem:[%s722_s1 + $0x98] sm:$0xff]  ;;  %v545_v24 = vld [vmem:[%s722_s1 + $0x10] sm:$0xff] }
   0x7   :  { %355 = vmatpush.bf16.msra.mxu2 %v565_v5  ;;  %v15_v15 = vld [vmem:[%s723_s0] sm:$0xff]  ;;  %v554_v22 = vld [vmem:[%s722_s1 + $0x58] sm:$0xff]  ;;  %v561_v25 = vld [vmem:[%s722_s1 + $0x90] sm:$0xff] }
   0x8   :  { %342 = vmatpush.bf16.msra.mxu1 %v557_v6  ;;  %v555_v16 = vld [vmem:[%s722_s1 + $0x60] sm:$0xff]  ;;  %96 = vst [vmem:[#allocation1] ss:$4 sm:$0xff] %v15_v15  ;;  %v570_v23 = vld [vmem:[%s722_s1 + $0xd8] sm:$0xff]  ;;  %v553_v26 = vld [vmem:[%s722_s1 + $0x50] sm:$0xff] }
   0x9   :  { %368 = vmatpush.bf16.msra.mxu3 %v573_v7  ;;  %v571_v17 = vld [vmem:[%s722_s1 + $0xe0] sm:$0xff]  ;;  %v569_v27 = vld [vmem:[%s722_s1 + $0xd0] sm:$0xff]  ;;  %v544_v28 = vld [vmem:[%s722_s1 + $0x8] sm:$0xff] }
   0xa   :  { %330 = vmatpush.bf16.msra.mxu0 %v548_v8  ;;  %v89_v19 = vld [vmem:[%s724_s2] sm:$0xf]  ;;  %v560_v29 = vld [vmem:[%s722_s1 + $0x88] sm:$0xff]  ;;  %v578_v36 = vld [vmem:[%s722_s1 + $0x118] sm:$0xff] }
   0xb   :  { %356 = vmatpush.bf16.msra.mxu2 %v564_v9  ;;  %92 = vperm.xlu0 %580, %v89_v19   ;;  %v552_v30 = vld [vmem:[%s722_s1 + $0x48] sm:$0xff]  ;;  %v543_v32 = vld [vmem:[%s722_s1] sm:$0xff]  ;;  %v577_v41 = vld [vmem:[%s722_s1 + $0x110] sm:$0xff] }
   0xc   :  { %343 = vmatpush.bf16.msra.mxu1 %v556_v10  ;;  %v568_v31 = vld [vmem:[%s722_s1 + $0xc8] sm:$0xff]  ;;  %v559_v33 = vld [vmem:[%s722_s1 + $0x80] sm:$0xff] }
   0xd   :  { %369 = vmatpush.bf16.msra.mxu3 %v572_v11  ;;  %v551_v34 = vld [vmem:[%s722_s1 + $0x40] sm:$0xff]  ;;  %v576_v42 = vld [vmem:[%s722_s1 + $0x108] sm:$0xff] }
   0xe   :  { %331 = vmatpush.bf16.msra.mxu0 %v547_v13  ;;  %v567_v35 = vld [vmem:[%s722_s1 + $0xc0] sm:$0xff] }
   0xf   :  { %357 = vmatpush.bf16.msra.mxu2 %v563_v14  ;;  %v100_v37 = vld.sshfl [vmem:[#allocation1] sm:$0xff pattern:$0x73625140]  ;;  %v102_v38 = vld.sshfl [vmem:[#allocation1 + $0x10] sm:$0xff pattern:$0x73625140] }
  0x10   :  { %344 = vmatpush.bf16.msra.mxu1 %v555_v16  ;;  %v101_v39 = vld.sshfl [vmem:[#allocation1 + $0x8] sm:$0xff pattern:$0x73625140]  ;;  %v103_v40 = vld.sshfl [vmem:[#allocation1 + $0x18] sm:$0xff pattern:$0x73625140] }
  0x11   :  { %370 = vmatpush.bf16.msra.mxu3 %v571_v17  ;;  %v575_v43 = vld [vmem:[%s722_s1 + $0x100] sm:$0xff] }
  0x12   :  { %332 = vmatpush.bf16.msra.mxu0 %v546_v20  ;;  %v104_v44 = vld.sshfl [vmem:[#allocation1 + $0x20] sm:$0xff pattern:$0x73625140] }
  0x13   :  { %358 = vmatpush.bf16.msra.mxu2 %v562_v21 }
  0x14   :  { %345 = vmatpush.bf16.msra.mxu1 %v554_v22 }
  0x15   :  { %371 = vmatpush.bf16.msra.mxu3 %v570_v23 }
  0x16   :  { %333 = vmatpush.bf16.msra.mxu0 %v545_v24 }
  0x17   :  { %359 = vmatpush.bf16.msra.mxu2 %v561_v25 }
  0x18   :  { %346 = vmatpush.bf16.msra.mxu1 %v553_v26 }
  0x19   :  { %372 = vmatpush.bf16.msra.mxu3 %v569_v27 }
  0x1a   :  { %334 = vmatpush.bf16.msra.mxu0 %v544_v28 }
  0x1b   :  { %360 = vmatpush.bf16.msra.mxu2 %v560_v29 }
  0x1c   :  { %347 = vmatpush.bf16.msra.mxu1 %v552_v30 }
  0x1d   :  { %373 = vmatpush.bf16.msra.mxu3 %v568_v31 }
  0x1e   :  { %335 = vmatpush.bf16.msra.mxu0 %v543_v32 }
  0x1f   :  { %361 = vmatpush.bf16.msra.mxu2 %v559_v33 }
  0x20   :  { %348 = vmatpush.bf16.msra.mxu1 %v551_v34 }
  0x21   :  { %374 = vmatpush.bf16.msra.mxu3 %v567_v35  ;;  %336 = vmatmul.bf16.vlgmr.msra.gmra.mxu0 %v100_v37 }
  0x22   :  { %384 = vmatpush.bf16.msrb.mxu0 %v578_v36  ;;  %362 = vmatmul.bf16.vlgmr.msra.gmra.mxu2 %v102_v38 }
  0x23   :  { %349 = vmatmul.bf16.vlgmr.msra.gmra.mxu1 %v101_v39 }
  0x24   :  { %375 = vmatmul.bf16.vlgmr.msra.gmra.mxu3 %v103_v40 }
  0x26   :  { %385 = vmatpush.bf16.msrb.mxu0 %v577_v41 }
  0x2a   :  { %386 = vmatpush.bf16.msrb.mxu0 %v576_v42 }
  0x2e   :  { %387 = vmatpush.bf16.msrb.mxu0 %v575_v43 }
  0x31   :  { %542 = vmatmul.msk.bf16.vlgmr.msrb.gmra.mxu0 %vm325_vm0, %v104_v44 }
  0x7d   :  { %v93_v47 = vpop.permute.xlu0 %92 }
  0x9e   :  { %v337_v45 = vpop.f32.mrf.mxu0 }
  0x9f   :  { %v338_v48 = vadd.f32 %v337_v45, %v93_v47 }
  0xa0   :  { %v350_v46 = vpop.f32.mrf.mxu1 }
  0xa1   :  { %v351_v52 = vadd.f32 %v350_v46, %v338_v48 }
  0xa5   :  { %v363_v49 = vpop.f32.mrf.mxu2 }
  0xa6   :  { %v339_v51 = vpop.f32.mrf.mxu0  ;;  %v364_v54 = vadd.f32 %v363_v49, %v351_v52 }
  0xa7   :  { %v376_v50 = vpop.f32.mrf.mxu3 }
  0xa8   :  { %v352_v53 = vpop.f32.mrf.mxu1  ;;  %v377_v56 = vadd.f32 %v376_v50, %v364_v54 }
  0xad   :  { %v365_v55 = vpop.f32.mrf.mxu2 }
  0xae   :  { %v389_v58 = vpop.f32.mrf.mxu0 }
  0xaf   :  { %v378_v57 = vpop.f32.mrf.mxu3  ;;  %v390_v59 = vadd.f32 %v389_v58, %v377_v56 }
  0xb1   :  { %393 = vst [vmem:[%s725_s3] sm:$0xf] %v390_v59 }
  0xb6   :  { %v391_v60 = vpop.f32.mrf.mxu0 }

// kernel: down_pixel_3d_layer_axis.11
= control target key start
LH: loop header
LB: loop body
LE: loop exit
PB: predicated region body
PF: predicated region fallthrough
CT: control target
= control target key end

     0   :  { %vm15_vm0 = vcmask 523264   ;;  %v81_v2 = vmov 64.0   ;;  %v82_v4 = vmov 0   ;;  %s118_s0 = inlined_call_operand.vmem [shape: f32[8,64], index: 0, kind: input, shape index: {}]   ;;  %s119_s1 = inlined_call_operand.vmem [shape: f32[8,1], index: 1, kind: input, shape index: {}]   ;;  %s120_s2 = inlined_call_operand.vmem [shape: f32[8,1], index: 2, kind: input, shape index: {}]   ;;  %s121_s3 = inlined_call_operand.vmem [shape: f32[8,64], index: 3, kind: output, shape index: {}]  }
   0x1   :  { %v14_v0 = vld [vmem:[%s118_s0] sm:$0xff]  ;;  %75 = vrcp.f32 %v81_v2  ;;  %73 = vset.pattern.permute.xlu1 %v82_v4  ;;  %74 = vset.pattern.permute.xlu0 %v82_v4 }
   0x2   :  { %v16_v1 = vsel %vm15_vm0, %v14_v0, 0.0  ;;  %v45_v3 = vld [vmem:[%s119_s1] sm:$0xff] }
   0x3   :  { %17 = vadd.xlane.f32.xlu0 %v16_v1  ;;  %49 = vperm.xlu1 %73, %v45_v3   ;;  %v46_v7 = vld [vmem:[%s120_s2] sm:$0xff] }
   0x7   :  { %v76_v5 = vpop.eup %75 }
   0x8   :  { %v20_v6 = vmul.f32 64.0, %v76_v5  ;;  %vm24_vm1 = vweird.f32 %v76_v5 }
   0xa   :  { %v21_v8 = vsub.f32 1.0, %v20_v6 }
   0xb   :  { %55 = vperm.xlu1 %73, %v46_v7  }
   0xc   :  { %v22_v9 = vmul.f32 %v76_v5, %v21_v8 }
   0xe   :  { %v23_v10 = vadd.f32 %v76_v5, %v22_v9 }
  0x10   :  { %v25_v11 = vsel %vm24_vm1, %v76_v5, %v23_v10 }
  0x75   :  { %v50_v24 = vpop.permute.xlu1 %49 }
  0x76   :  { %v18_v12 = vpop.xlane.xlu0 %17 }
  0x77   :  { %v26_v13 = vmul.f32 %v25_v11, %v18_v12 }
  0x79   :  { %v27_v14 = vsub.f32 %v14_v0, %v26_v13 }
  0x7b   :  { %v28_v15 = vmul.f32 %v27_v14, %v27_v14 }
  0x7d   :  { %v29_v16 = vsel %vm15_vm0, %v28_v15, 0.0  ;;  %v56_v30 = vpop.permute.xlu1 %55 }
  0x7e   :  { %30 = vadd.xlane.f32.xlu0 %v29_v16 }
  0xf1   :  { %v31_v17 = vpop.xlane.xlu0 %30 }
  0xf2   :  { %v32_v18 = vmul.f32 %v31_v17, %v25_v11 }
  0xf4   :  { %v33_v19 = vadd.f32 1e-05, %v32_v18 }
  0xf6   :  { %77 = vrsqrt.f32 %v33_v19  ;;  %vm40_vm3 = vweird.f32 %v33_v19 }
  0xfc   :  { %v78_v20 = vpop.eup %77 }
  0xfd   :  { %v35_v21 = vmul.f32 %v78_v20, %v33_v19  ;;  %vm41_vm2 = vweird.f32 %v78_v20 }
  0xfe   :  { %vm42_vm4 = vmor %vm40_vm3, %vm41_vm2 }
  0xff   :  { %v36_v22 = vmul.f32 %v78_v20, %v35_v21 }
 0x101   :  { %v37_v23 = vmul.f32 0.5, %v36_v22 }
 0x103   :  { %v38_v25 = vsub.f32 1.5, %v37_v23 }
 0x105   :  { %v39_v26 = vmul.f32 %v78_v20, %v38_v25 }
 0x107   :  { %v43_v27 = vsel %vm42_vm4, %v78_v20, %v39_v26 }
 0x108   :  { %v44_v28 = vmul.f32 %v43_v27, %v27_v14 }
 0x10a   :  { %v52_v29 = vmul.f32 %v50_v24, %v44_v28 }
 0x10c   :  { %v58_v31 = vadd.f32 %v56_v30, %v52_v29 }
 0x10e   :  { %v60_v32 = vmin.f32 %v58_v31, 0.0  ;;  %vm59_vm5 = vcmp.gt.f32.partialorder %v58_v31, 0.0 }
 0x110   :  { %v61_v33 = vmul.f32 1.442695, %v60_v32 }
 0x112   :  { %79 = vpow2.f32 %v61_v33 }
 0x118   :  { %v80_v34 = vpop.eup %79 }
 0x119   :  { %v70_v35 = vadd.f32 -1.0, %v80_v34 }
 0x11b   :  { %v64_v36 = vsel %vm59_vm5, %v58_v31, %v70_v35 }
 0x11c   :  { %65 = vst.msk [vmem:[%s121_s3] sm:$0xff] %vm15_vm0, %v64_v36 }

</bundles_post_ra>
